<compile_context>
chip_gen: v6e
topology: v6e:2x2x1
jax: 0.10.0
libtpu: 0.0.40
codegen_flags: <defaults>
</compile_context>

<pallas_src>
from functools import partial

import jax
import jax.numpy as jnp
from jax.experimental import pallas as pl
from jax.experimental.pallas import tpu as pltpu

EMBED_DIM = 300
IN_DIM = 2 * EMBED_DIM + 4   # 604
H1 = 400
H2 = 200
OUT_DIM = 4

# MXU / lane aligned padded sizes.
IN_PAD = 640
H1_PAD = 512
H2_PAD = 256
OUT_PAD = 128
NEG_INF = -1e30  # bias for padded class lanes -> exp() underflows to 0 in softmax


def _mlp_kernel(x_ref, w1_ref, b1_ref, w2_ref, b2_ref, w3_ref, b3_ref, o_ref):
    x = x_ref[...]

    # fc1 + ReLU (MXU matmul, f32 accumulate; VPU max)
    a1 = jnp.dot(x, w1_ref[...], preferred_element_type=jnp.float32) + b1_ref[...]
    h1 = jnp.maximum(a1, 0.0)

    # fc2 + Sigmoid (exp and approx reciprocal both land on the EUP slot -> ~free)
    a2 = jnp.dot(h1, w2_ref[...], preferred_element_type=jnp.float32) + b2_ref[...]
    h2 = pl.reciprocal(1.0 + jnp.exp(-a2), approx=True)

    # fc3 + LogSoftmax over the class dim.  Padded class lanes have zero weights
    # and a -1e30 bias, so max/sum effectively reduce only over the 4 real classes.
    a3 = jnp.dot(h2, w3_ref[...], preferred_element_type=jnp.float32) + b3_ref[...]
    m = jnp.max(a3, axis=-1, keepdims=True)
    s = a3 - m
    lse = jnp.log(jnp.sum(jnp.exp(s), axis=-1, keepdims=True))
    o_ref[...] = (s - lse).astype(o_ref.dtype)


def _pad2(a, rows, cols, fill=0.0):
    return jnp.pad(a, ((0, rows - a.shape[0]), (0, cols - a.shape[1])),
                   constant_values=fill)


@partial(jax.jit, static_argnames=("tb_max",))
def neural_net_forward(x, w1, b1, w2, b2, w3, b3, *, tb_max=512):
    """x: [B, 604] f32.  Weights [in, out] (pre-transposed), biases [1, out]."""
    B = x.shape[0]

    # --- pad parameters to MXU-friendly shapes (zeros are numerically inert) ---
    w1p = _pad2(w1, IN_PAD, H1_PAD)
    b1p = _pad2(b1, 1, H1_PAD)
    w2p = _pad2(w2, H1_PAD, H2_PAD)
    b2p = _pad2(b2, 1, H2_PAD)
    w3p = _pad2(w3, H2_PAD, OUT_PAD)             # padded rows/cols are zero
    b3p = jnp.pad(b3, ((0, 0), (0, OUT_PAD - b3.shape[1])),
                  constant_values=NEG_INF)        # padded class lanes -> -inf-ish

    # --- choose batch tile (multiple of 8 sublanes) and pad batch to it ---
    tb = min(tb_max, max(8, ((B + 7) // 8) * 8))
    bp = ((B + tb - 1) // tb) * tb
    xp = jnp.pad(x, ((0, bp - B), (0, IN_PAD - x.shape[1])))

    out = pl.pallas_call(
        _mlp_kernel,
        out_shape=jax.ShapeDtypeStruct((bp, OUT_PAD), jnp.float32),
        grid=(bp // tb,),
        in_specs=[
            pl.BlockSpec((tb, IN_PAD), lambda i: (i, 0)),        # x: streamed per tile
            pl.BlockSpec((IN_PAD, H1_PAD), lambda i: (0, 0)),    # weights stay resident
            pl.BlockSpec((1, H1_PAD), lambda i: (0, 0)),
            pl.BlockSpec((H1_PAD, H2_PAD), lambda i: (0, 0)),
            pl.BlockSpec((1, H2_PAD), lambda i: (0, 0)),
            pl.BlockSpec((H2_PAD, OUT_PAD), lambda i: (0, 0)),
            pl.BlockSpec((1, OUT_PAD), lambda i: (0, 0)),
        ],
        out_specs=pl.BlockSpec((tb, OUT_PAD), lambda i: (i, 0)),  # lane-dense output
        compiler_params=pltpu.CompilerParams(
            dimension_semantics=("parallel",),
            vmem_limit_bytes=64 * 1024 * 1024),
    )(xp, w1p, b1p, w2p, b2p, w3p, b3p)

    return out[:B, :OUT_DIM]


def init_params(key):
    """Deterministic PyTorch-Linear-style init (uniform +/- 1/sqrt(fan_in))."""
    ks = jax.random.split(key, 6)

    def linear(kw, kb, fan_in, fan_out):
        bound = 1.0 / jnp.sqrt(jnp.float32(fan_in))
        w = jax.random.uniform(kw, (fan_in, fan_out), jnp.float32, -bound, bound)
        b = jax.random.uniform(kb, (1, fan_out), jnp.float32, -bound, bound)
        return w, b

    w1, b1 = linear(ks[0], ks[1], IN_DIM, H1)
    w2, b2 = linear(ks[2], ks[3], H1, H2)
    w3, b3 = linear(ks[4], ks[5], H2, OUT_DIM)
    return w1, b1, w2, b2, w3, b3


def _reference(x, w1, b1, w2, b2, w3, b3):
    a1 = x @ w1 + b1
    h1 = jnp.maximum(a1, 0.0)
    a2 = h1 @ w2 + b2
    h2 = jax.nn.sigmoid(a2)
    a3 = h2 @ w3 + b3
    return jax.nn.log_softmax(a3, axis=-1)


if __name__ == "__main__":
    key = jax.random.PRNGKey(0)
    kx, kx2, kp = jax.random.split(key, 3)
    params = init_params(kp)

    # Small single-tile case.
    batch = 8
    x = jax.random.normal(kx, (batch, IN_DIM), jnp.float32)
    out = jax.block_until_ready(neural_net_forward(x, *params))
    ref = _reference(x, *params)
    assert out.shape == (batch, OUT_DIM)
    assert jnp.allclose(out, ref, atol=2e-2, rtol=2e-2), float(jnp.abs(out - ref).max())

    # Ragged multi-tile case (exercises the batch grid + padding/slicing path).
    batch2 = 50
    x2 = jax.random.normal(kx2, (batch2, IN_DIM), jnp.float32)
    out2 = jax.block_until_ready(neural_net_forward(x2, *params, tb_max=16))
    ref2 = _reference(x2, *params)
    assert out2.shape == (batch2, OUT_DIM)
    assert jnp.allclose(out2, ref2, atol=2e-2, rtol=2e-2), float(jnp.abs(out2 - ref2).max())

    print("KERNEL_OK")
</pallas_src>

<mosaic_0001>
module attributes {stable_mosaic.version = 11 : i64} {
  func.func @_mlp_kernel(%arg0: i32, %arg1: memref<8x640xf32, #tpu.memory_space<vmem>>, %arg2: memref<640x512xf32, #tpu.memory_space<vmem>>, %arg3: memref<1x512xf32, #tpu.memory_space<vmem>>, %arg4: memref<512x256xf32, #tpu.memory_space<vmem>>, %arg5: memref<1x256xf32, #tpu.memory_space<vmem>>, %arg6: memref<256x128xf32, #tpu.memory_space<vmem>>, %arg7: memref<1x128xf32, #tpu.memory_space<vmem>>, %arg8: memref<8x128xf32, #tpu.memory_space<vmem>>) attributes {dimension_semantics = [#tpu.dimension_semantics<parallel>], iteration_bounds = array<i64: 1>, scalar_prefetch = 0 : i64, scratch_operands = 0 : i64, tpu.core_type = #tpu.core_type<tc>, window_params = [{transform_indices = @transform_0, window_bounds = array<i64: 8, 640>}, {pipeline_mode = #tpu.pipeline_mode<synchronous>, transform_indices = @transform_1, window_bounds = array<i64: 640, 512>}, {pipeline_mode = #tpu.pipeline_mode<synchronous>, transform_indices = @transform_2, window_bounds = array<i64: 1, 512>}, {pipeline_mode = #tpu.pipeline_mode<synchronous>, transform_indices = @transform_3, window_bounds = array<i64: 512, 256>}, {pipeline_mode = #tpu.pipeline_mode<synchronous>, transform_indices = @transform_4, window_bounds = array<i64: 1, 256>}, {pipeline_mode = #tpu.pipeline_mode<synchronous>, transform_indices = @transform_5, window_bounds = array<i64: 256, 128>}, {pipeline_mode = #tpu.pipeline_mode<synchronous>, transform_indices = @transform_6, window_bounds = array<i64: 1, 128>}, {transform_indices = @transform_7, window_bounds = array<i64: 8, 128>}]} {
    %c0 = arith.constant 0 : index
    %c0_0 = arith.constant 0 : index
    %0 = vector.load %arg1[%c0, %c0_0] : memref<8x640xf32, #tpu.memory_space<vmem>>, vector<8x640xf32>
    %c0_1 = arith.constant 0 : index
    %c0_2 = arith.constant 0 : index
    %1 = vector.load %arg2[%c0_1, %c0_2] : memref<640x512xf32, #tpu.memory_space<vmem>>, vector<640x512xf32>
    %cst = arith.constant dense<0.000000e+00> : vector<8x512xf32>
    %2 = tpu.matmul %0, %1, %cst {dimension_numbers = #tpu.dot_dimension_numbers<[1], [0], [0], [1], [0, 0, 1, 1], [], []>} : vector<8x640xf32>, vector<640x512xf32>, vector<8x512xf32> -> vector<8x512xf32>
    %c0_3 = arith.constant 0 : index
    %c0_4 = arith.constant 0 : index
    %3 = vector.load %arg3[%c0_3, %c0_4] : memref<1x512xf32, #tpu.memory_space<vmem>>, vector<1x512xf32>
    %4 = vector.broadcast %3 : vector<1x512xf32> to vector<8x512xf32>
    %5 = arith.addf %2, %4 : vector<8x512xf32>
    %cst_5 = arith.constant 0.000000e+00 : f32
    %6 = vector.broadcast %cst_5 : f32 to vector<8x512xf32>
    %7 = arith.maximumf %5, %6 : vector<8x512xf32>
    %c0_6 = arith.constant 0 : index
    %c0_7 = arith.constant 0 : index
    %8 = vector.load %arg4[%c0_6, %c0_7] : memref<512x256xf32, #tpu.memory_space<vmem>>, vector<512x256xf32>
    %cst_8 = arith.constant dense<0.000000e+00> : vector<8x256xf32>
    %9 = tpu.matmul %7, %8, %cst_8 {dimension_numbers = #tpu.dot_dimension_numbers<[1], [0], [0], [1], [0, 0, 1, 1], [], []>} : vector<8x512xf32>, vector<512x256xf32>, vector<8x256xf32> -> vector<8x256xf32>
    %c0_9 = arith.constant 0 : index
    %c0_10 = arith.constant 0 : index
    %10 = vector.load %arg5[%c0_9, %c0_10] : memref<1x256xf32, #tpu.memory_space<vmem>>, vector<1x256xf32>
    %11 = vector.broadcast %10 : vector<1x256xf32> to vector<8x256xf32>
    %12 = arith.addf %9, %11 : vector<8x256xf32>
    %cst_11 = arith.constant 0.000000e+00 : f32
    %13 = vector.broadcast %cst_11 : f32 to vector<8x256xf32>
    %14 = arith.subf %13, %12 : vector<8x256xf32>
    %15 = math.exp %14 : vector<8x256xf32>
    %cst_12 = arith.constant 1.000000e+00 : f32
    %16 = vector.broadcast %cst_12 : f32 to vector<8x256xf32>
    %17 = arith.addf %16, %15 : vector<8x256xf32>
    %18 = tpu.reciprocal %17 {approx = true} : vector<8x256xf32> -> vector<8x256xf32>
    %c0_13 = arith.constant 0 : index
    %c0_14 = arith.constant 0 : index
    %19 = vector.load %arg6[%c0_13, %c0_14] : memref<256x128xf32, #tpu.memory_space<vmem>>, vector<256x128xf32>
    %cst_15 = arith.constant dense<0.000000e+00> : vector<8x128xf32>
    %20 = tpu.matmul %18, %19, %cst_15 {dimension_numbers = #tpu.dot_dimension_numbers<[1], [0], [0], [1], [0, 0, 1, 1], [], []>} : vector<8x256xf32>, vector<256x128xf32>, vector<8x128xf32> -> vector<8x128xf32>
    %c0_16 = arith.constant 0 : index
    %c0_17 = arith.constant 0 : index
    %21 = vector.load %arg7[%c0_16, %c0_17] : memref<1x128xf32, #tpu.memory_space<vmem>>, vector<1x128xf32>
    %22 = vector.broadcast %21 : vector<1x128xf32> to vector<8x128xf32>
    %23 = arith.addf %20, %22 : vector<8x128xf32>
    %cst_18 = arith.constant dense<0xFF800000> : vector<8xf32>
    %24 = vector.multi_reduction <maximumf>, %23, %cst_18 [1] : vector<8x128xf32> to vector<8xf32>
    %25 = vector.shape_cast %24 : vector<8xf32> to vector<8x1xf32>
    %26 = vector.broadcast %25 : vector<8x1xf32> to vector<8x128xf32>
    %27 = arith.subf %23, %26 : vector<8x128xf32>
    %28 = math.exp %27 : vector<8x128xf32>
    %cst_19 = arith.constant dense<0.000000e+00> : vector<8xf32>
    %29 = vector.multi_reduction <add>, %28, %cst_19 [1] : vector<8x128xf32> to vector<8xf32>
    %30 = vector.shape_cast %29 : vector<8xf32> to vector<8x1xf32>
    %31 = math.log %30 : vector<8x1xf32>
    %32 = vector.broadcast %31 : vector<8x1xf32> to vector<8x128xf32>
    %33 = arith.subf %27, %32 : vector<8x128xf32>
    %c0_20 = arith.constant 0 : index
    %c0_21 = arith.constant 0 : index
    %34 = vector.load %arg8[%c0_20, %c0_21] : memref<8x128xf32, #tpu.memory_space<vmem>>, vector<8x128xf32>
    tpu.vector_store %arg8[%c0_20, %c0_21], %33 {strides = array<i32>} : memref<8x128xf32, #tpu.memory_space<vmem>>, vector<8x128xf32>,
    return
  }
  func.func @transform_0(%arg0: i32) -> (i32, i32) {
    %c0_i32 = arith.constant 0 : i32
    %c0_i32_0 = arith.constant 0 : i32
    return %arg0, %c0_i32 : i32, i32
  }
  func.func @transform_1(%arg0: i32) -> (i32, i32) {
    %c0_i32 = arith.constant 0 : i32
    %c0_i32_0 = arith.constant 0 : i32
    %c0_i32_1 = arith.constant 0 : i32
    return %c0_i32, %c0_i32_0 : i32, i32
  }
  func.func @transform_2(%arg0: i32) -> (i32, i32) {
    %c0_i32 = arith.constant 0 : i32
    %c0_i32_0 = arith.constant 0 : i32
    %c0_i32_1 = arith.constant 0 : i32
    return %c0_i32, %c0_i32_0 : i32, i32
  }
  func.func @transform_3(%arg0: i32) -> (i32, i32) {
    %c0_i32 = arith.constant 0 : i32
    %c0_i32_0 = arith.constant 0 : i32
    %c0_i32_1 = arith.constant 0 : i32
    return %c0_i32, %c0_i32_0 : i32, i32
  }
  func.func @transform_4(%arg0: i32) -> (i32, i32) {
    %c0_i32 = arith.constant 0 : i32
    %c0_i32_0 = arith.constant 0 : i32
    %c0_i32_1 = arith.constant 0 : i32
    return %c0_i32, %c0_i32_0 : i32, i32
  }
  func.func @transform_5(%arg0: i32) -> (i32, i32) {
    %c0_i32 = arith.constant 0 : i32
    %c0_i32_0 = arith.constant 0 : i32
    %c0_i32_1 = arith.constant 0 : i32
    return %c0_i32, %c0_i32_0 : i32, i32
  }
  func.func @transform_6(%arg0: i32) -> (i32, i32) {
    %c0_i32 = arith.constant 0 : i32
    %c0_i32_0 = arith.constant 0 : i32
    %c0_i32_1 = arith.constant 0 : i32
    return %c0_i32, %c0_i32_0 : i32, i32
  }
  func.func @transform_7(%arg0: i32) -> (i32, i32) {
    %c0_i32 = arith.constant 0 : i32
    %c0_i32_0 = arith.constant 0 : i32
    return %arg0, %c0_i32 : i32, i32
  }
}

</mosaic_0001>

<bundles_post_ra>
// kernel: neural_net_forward.1
= control target key start
LH: loop header
LB: loop body
LE: loop exit
PB: predicated region body
PF: predicated region fallthrough
CT: control target
= control target key end

     0   :  { %s2812_s1 = inlined_call_operand.vmem [shape: f32[640,512], index: 1, kind: input, shape index: {}]   ;;  %s2813_s0 = inlined_call_operand.vmem [shape: f32[8,640], index: 0, kind: input, shape index: {}]   ;;  %s2814_s3 = inlined_call_operand.vmem [shape: f32[512,256], index: 3, kind: input, shape index: {}]   ;;  %s2815_s2 = inlined_call_operand.vmem [shape: f32[1,512], index: 2, kind: input, shape index: {}]   ;;  %s2816_s5 = inlined_call_operand.vmem [shape: f32[256,128], index: 5, kind: input, shape index: {}]   ;;  %s2817_s4 = inlined_call_operand.vmem [shape: f32[1,256], index: 4, kind: input, shape index: {}]   ;;  %s2818_s6 = inlined_call_operand.vmem [shape: f32[1,128], index: 6, kind: input, shape index: {}]   ;;  %s2819_s7 = inlined_call_operand.vmem [shape: f32[8,128], index: 7, kind: output, shape index: {}]  }
   0x1   :  { %v92_v0 = vld [vmem:[%s2812_s1 + $0x1e8] sm:$0xff]  ;;  %v91_v2 = vld [vmem:[%s2812_s1 + $0x1e0] sm:$0xff] }
   0x2   :  { %v220_v1 = vld [vmem:[%s2812_s1 + $0x5e8] sm:$0xff]  ;;  %373 = vmatprep.subr.mxu0 %v92_v0  ;;  %v219_v3 = vld [vmem:[%s2812_s1 + $0x5e0] sm:$0xff] }
   0x3   :  { %444 = vmatprep.subr.mxu1 %v220_v1  ;;  %v88_v4 = vld [vmem:[%s2812_s1 + $0x1c8] sm:$0xff]  ;;  %374 = vmatpush1.msra.mxu0 %v91_v2  ;;  %v87_v6 = vld [vmem:[%s2812_s1 + $0x1c0] sm:$0xff] }
   0x4   :  { %v216_v5 = vld [vmem:[%s2812_s1 + $0x5c8] sm:$0xff]  ;;  %445 = vmatpush1.msra.mxu1 %v219_v3  ;;  %v215_v7 = vld [vmem:[%s2812_s1 + $0x5c0] sm:$0xff]  ;;  %375 = vmatprep.subr.mxu0 %v88_v4 }
   0x5   :  { %v84_v8 = vld [vmem:[%s2812_s1 + $0x1a8] sm:$0xff]  ;;  %446 = vmatprep.subr.mxu1 %v216_v5  ;;  %v83_v10 = vld [vmem:[%s2812_s1 + $0x1a0] sm:$0xff]  ;;  %376 = vmatpush1.msra.mxu0 %v87_v6 }
   0x6   :  { %v212_v9 = vld [vmem:[%s2812_s1 + $0x5a8] sm:$0xff]  ;;  %v211_v11 = vld [vmem:[%s2812_s1 + $0x5a0] sm:$0xff]  ;;  %447 = vmatpush1.msra.mxu1 %v215_v7  ;;  %377 = vmatprep.subr.mxu0 %v84_v8 }
   0x7   :  { %v80_v12 = vld [vmem:[%s2812_s1 + $0x188] sm:$0xff]  ;;  %448 = vmatprep.subr.mxu1 %v212_v9  ;;  %v79_v14 = vld [vmem:[%s2812_s1 + $0x180] sm:$0xff]  ;;  %378 = vmatpush1.msra.mxu0 %v83_v10 }
   0x8   :  { %v208_v13 = vld [vmem:[%s2812_s1 + $0x588] sm:$0xff]  ;;  %v207_v15 = vld [vmem:[%s2812_s1 + $0x580] sm:$0xff]  ;;  %449 = vmatpush1.msra.mxu1 %v211_v11  ;;  %379 = vmatprep.subr.mxu0 %v80_v12 }
   0x9   :  { %v76_v16 = vld [vmem:[%s2812_s1 + $0x168] sm:$0xff]  ;;  %450 = vmatprep.subr.mxu1 %v208_v13  ;;  %v75_v18 = vld [vmem:[%s2812_s1 + $0x160] sm:$0xff]  ;;  %380 = vmatpush1.msra.mxu0 %v79_v14 }
   0xa   :  { %v204_v17 = vld [vmem:[%s2812_s1 + $0x568] sm:$0xff]  ;;  %v203_v19 = vld [vmem:[%s2812_s1 + $0x560] sm:$0xff]  ;;  %451 = vmatpush1.msra.mxu1 %v207_v15  ;;  %381 = vmatprep.subr.mxu0 %v76_v16 }
   0xb   :  { %v72_v20 = vld [vmem:[%s2812_s1 + $0x148] sm:$0xff]  ;;  %452 = vmatprep.subr.mxu1 %v204_v17  ;;  %v71_v22 = vld [vmem:[%s2812_s1 + $0x140] sm:$0xff]  ;;  %382 = vmatpush1.msra.mxu0 %v75_v18 }
   0xc   :  { %v200_v21 = vld [vmem:[%s2812_s1 + $0x548] sm:$0xff]  ;;  %v199_v23 = vld [vmem:[%s2812_s1 + $0x540] sm:$0xff]  ;;  %453 = vmatpush1.msra.mxu1 %v203_v19  ;;  %383 = vmatprep.subr.mxu0 %v72_v20 }
   0xd   :  { %v68_v24 = vld [vmem:[%s2812_s1 + $0x128] sm:$0xff]  ;;  %454 = vmatprep.subr.mxu1 %v200_v21  ;;  %v67_v26 = vld [vmem:[%s2812_s1 + $0x120] sm:$0xff]  ;;  %384 = vmatpush1.msra.mxu0 %v71_v22 }
   0xe   :  { %v196_v25 = vld [vmem:[%s2812_s1 + $0x528] sm:$0xff]  ;;  %v195_v27 = vld [vmem:[%s2812_s1 + $0x520] sm:$0xff]  ;;  %455 = vmatpush1.msra.mxu1 %v199_v23  ;;  %385 = vmatprep.subr.mxu0 %v68_v24 }
   0xf   :  { %v64_v28 = vld [vmem:[%s2812_s1 + $0x108] sm:$0xff]  ;;  %456 = vmatprep.subr.mxu1 %v196_v25  ;;  %v63_v30 = vld [vmem:[%s2812_s1 + $0x100] sm:$0xff]  ;;  %386 = vmatpush1.msra.mxu0 %v67_v26 }
  0x10   :  { %v192_v29 = vld [vmem:[%s2812_s1 + $0x508] sm:$0xff]  ;;  %v191_v31 = vld [vmem:[%s2812_s1 + $0x500] sm:$0xff]  ;;  %457 = vmatpush1.msra.mxu1 %v195_v27  ;;  %387 = vmatprep.subr.mxu0 %v64_v28 }
  0x11   :  { %v60_v32 = vld [vmem:[%s2812_s1 + $0xe8] sm:$0xff]  ;;  %458 = vmatprep.subr.mxu1 %v192_v29  ;;  %v59_v34 = vld [vmem:[%s2812_s1 + $0xe0] sm:$0xff]  ;;  %388 = vmatpush1.msra.mxu0 %v63_v30 }
  0x12   :  { %v188_v33 = vld [vmem:[%s2812_s1 + $0x4e8] sm:$0xff]  ;;  %v187_v35 = vld [vmem:[%s2812_s1 + $0x4e0] sm:$0xff]  ;;  %459 = vmatpush1.msra.mxu1 %v191_v31  ;;  %389 = vmatprep.subr.mxu0 %v60_v32 }
  0x13   :  { %v56_v36 = vld [vmem:[%s2812_s1 + $0xc8] sm:$0xff]  ;;  %460 = vmatprep.subr.mxu1 %v188_v33  ;;  %v55_v38 = vld [vmem:[%s2812_s1 + $0xc0] sm:$0xff]  ;;  %390 = vmatpush1.msra.mxu0 %v59_v34 }
  0x14   :  { %v184_v37 = vld [vmem:[%s2812_s1 + $0x4c8] sm:$0xff]  ;;  %v183_v39 = vld [vmem:[%s2812_s1 + $0x4c0] sm:$0xff]  ;;  %461 = vmatpush1.msra.mxu1 %v187_v35  ;;  %391 = vmatprep.subr.mxu0 %v56_v36 }
  0x15   :  { %v52_v40 = vld [vmem:[%s2812_s1 + $0xa8] sm:$0xff]  ;;  %462 = vmatprep.subr.mxu1 %v184_v37  ;;  %v51_v42 = vld [vmem:[%s2812_s1 + $0xa0] sm:$0xff]  ;;  %392 = vmatpush1.msra.mxu0 %v55_v38 }
  0x16   :  { %v180_v41 = vld [vmem:[%s2812_s1 + $0x4a8] sm:$0xff]  ;;  %v179_v43 = vld [vmem:[%s2812_s1 + $0x4a0] sm:$0xff]  ;;  %463 = vmatpush1.msra.mxu1 %v183_v39  ;;  %393 = vmatprep.subr.mxu0 %v52_v40 }
  0x17   :  { %v48_v44 = vld [vmem:[%s2812_s1 + $0x88] sm:$0xff]  ;;  %464 = vmatprep.subr.mxu1 %v180_v41  ;;  %v47_v46 = vld [vmem:[%s2812_s1 + $0x80] sm:$0xff]  ;;  %394 = vmatpush1.msra.mxu0 %v51_v42 }
  0x18   :  { %v176_v45 = vld [vmem:[%s2812_s1 + $0x488] sm:$0xff]  ;;  %v175_v47 = vld [vmem:[%s2812_s1 + $0x480] sm:$0xff]  ;;  %465 = vmatpush1.msra.mxu1 %v179_v43  ;;  %395 = vmatprep.subr.mxu0 %v48_v44 }
  0x19   :  { %v44_v48 = vld [vmem:[%s2812_s1 + $0x68] sm:$0xff]  ;;  %466 = vmatprep.subr.mxu1 %v176_v45  ;;  %v43_v50 = vld [vmem:[%s2812_s1 + $0x60] sm:$0xff]  ;;  %396 = vmatpush1.msra.mxu0 %v47_v46 }
  0x1a   :  { %v172_v49 = vld [vmem:[%s2812_s1 + $0x468] sm:$0xff]  ;;  %v171_v51 = vld [vmem:[%s2812_s1 + $0x460] sm:$0xff]  ;;  %467 = vmatpush1.msra.mxu1 %v175_v47  ;;  %397 = vmatprep.subr.mxu0 %v44_v48 }
  0x1b   :  { %v40_v52 = vld [vmem:[%s2812_s1 + $0x48] sm:$0xff]  ;;  %468 = vmatprep.subr.mxu1 %v172_v49  ;;  %v39_v54 = vld [vmem:[%s2812_s1 + $0x40] sm:$0xff]  ;;  %398 = vmatpush1.msra.mxu0 %v43_v50 }
  0x1c   :  { %v168_v53 = vld [vmem:[%s2812_s1 + $0x448] sm:$0xff]  ;;  %v167_v55 = vld [vmem:[%s2812_s1 + $0x440] sm:$0xff]  ;;  %469 = vmatpush1.msra.mxu1 %v171_v51  ;;  %399 = vmatprep.subr.mxu0 %v40_v52 }
  0x1d   :  { %v36_v56 = vld [vmem:[%s2812_s1 + $0x28] sm:$0xff]  ;;  %470 = vmatprep.subr.mxu1 %v168_v53  ;;  %v35_v58 = vld [vmem:[%s2812_s1 + $0x20] sm:$0xff]  ;;  %400 = vmatpush1.msra.mxu0 %v39_v54 }
  0x1e   :  { %v164_v57 = vld [vmem:[%s2812_s1 + $0x428] sm:$0xff]  ;;  %v163_v59 = vld [vmem:[%s2812_s1 + $0x420] sm:$0xff]  ;;  %471 = vmatpush1.msra.mxu1 %v167_v55  ;;  %401 = vmatprep.subr.mxu0 %v36_v56 }
  0x1f   :  { %v32_v60 = vld [vmem:[%s2812_s1 + $0x8] sm:$0xff]  ;;  %472 = vmatprep.subr.mxu1 %v164_v57  ;;  %v31_v62 = vld [vmem:[%s2812_s1] sm:$0xff]  ;;  %402 = vmatpush1.msra.mxu0 %v35_v58 }
  0x20   :  { %v160_v61 = vld [vmem:[%s2812_s1 + $0x408] sm:$0xff]  ;;  %v159_v63 = vld [vmem:[%s2812_s1 + $0x400] sm:$0xff]  ;;  %473 = vmatpush1.msra.mxu1 %v163_v59  ;;  %403 = vmatprep.subr.mxu0 %v32_v60 }
  0x21   :  { %v156_v0 = vld [vmem:[%s2812_s1 + $0x3e8] sm:$0xff]  ;;  %474 = vmatprep.subr.mxu1 %v160_v61  ;;  %v155_v2 = vld [vmem:[%s2812_s1 + $0x3e0] sm:$0xff]  ;;  %404 = vmatpush1.msra.mxu0 %v31_v62 }
  0x22   :  { %v284_v1 = vld [vmem:[%s2812_s1 + $0x7e8] sm:$0xff]  ;;  %v283_v3 = vld [vmem:[%s2812_s1 + $0x7e0] sm:$0xff]  ;;  %475 = vmatpush1.msra.mxu1 %v159_v63  ;;  %405 = vmatprep.subr.mxu0 %v156_v0 }
  0x23   :  { %v152_v4 = vld [vmem:[%s2812_s1 + $0x3c8] sm:$0xff]  ;;  %476 = vmatprep.subr.mxu1 %v284_v1  ;;  %v151_v6 = vld [vmem:[%s2812_s1 + $0x3c0] sm:$0xff]  ;;  %406 = vmatpush2.msra.mxu0 %v155_v2  ;;  %v1706_v2 = vld [vmem:[%s2813_s0 + $0x18] sm:$0xff] }
  0x24   :  { %v280_v5 = vld [vmem:[%s2812_s1 + $0x7c8] sm:$0xff]  ;;  %v279_v7 = vld [vmem:[%s2812_s1 + $0x7c0] sm:$0xff]  ;;  %477 = vmatpush2.msra.mxu1 %v283_v3  ;;  %407 = vmatprep.subr.mxu0 %v152_v4  ;;  %v94_v4 = vld [vmem:[%s2812_s1 + $0x1f8] sm:$0xff] }
  0x25   :  { %v148_v8 = vld [vmem:[%s2812_s1 + $0x3a8] sm:$0xff]  ;;  %478 = vmatprep.subr.mxu1 %v280_v5  ;;  %v147_v10 = vld [vmem:[%s2812_s1 + $0x3a0] sm:$0xff]  ;;  %408 = vmatpush2.msra.mxu0 %v151_v6  ;;  %v1718_v5 = vld [vmem:[%s2813_s0 + $0x10] sm:$0xff] }
  0x26   :  { %v276_v9 = vld [vmem:[%s2812_s1 + $0x7a8] sm:$0xff]  ;;  %v275_v11 = vld [vmem:[%s2812_s1 + $0x7a0] sm:$0xff]  ;;  %479 = vmatpush2.msra.mxu1 %v279_v7  ;;  %409 = vmatprep.subr.mxu0 %v148_v8  ;;  %v93_v7 = vld [vmem:[%s2812_s1 + $0x1f0] sm:$0xff] }
  0x27   :  { %v144_v12 = vld [vmem:[%s2812_s1 + $0x388] sm:$0xff]  ;;  %480 = vmatprep.subr.mxu1 %v276_v9  ;;  %v143_v14 = vld [vmem:[%s2812_s1 + $0x380] sm:$0xff]  ;;  %410 = vmatpush2.msra.mxu0 %v147_v10  ;;  %v90_v9 = vld [vmem:[%s2812_s1 + $0x1d8] sm:$0xff] }
  0x28   :  { %v272_v13 = vld [vmem:[%s2812_s1 + $0x788] sm:$0xff]  ;;  %v271_v15 = vld [vmem:[%s2812_s1 + $0x780] sm:$0xff]  ;;  %481 = vmatpush2.msra.mxu1 %v275_v11  ;;  %411 = vmatprep.subr.mxu0 %v144_v12  ;;  %v89_v11 = vld [vmem:[%s2812_s1 + $0x1d0] sm:$0xff] }
  0x29   :  { %v140_v16 = vld [vmem:[%s2812_s1 + $0x368] sm:$0xff]  ;;  %482 = vmatprep.subr.mxu1 %v272_v13  ;;  %v139_v18 = vld [vmem:[%s2812_s1 + $0x360] sm:$0xff]  ;;  %412 = vmatpush2.msra.mxu0 %v143_v14  ;;  %v86_v13 = vld [vmem:[%s2812_s1 + $0x1b8] sm:$0xff] }
  0x2a   :  { %v268_v17 = vld [vmem:[%s2812_s1 + $0x768] sm:$0xff]  ;;  %v267_v19 = vld [vmem:[%s2812_s1 + $0x760] sm:$0xff]  ;;  %483 = vmatpush2.msra.mxu1 %v271_v15  ;;  %413 = vmatprep.subr.mxu0 %v140_v16  ;;  %v85_v15 = vld [vmem:[%s2812_s1 + $0x1b0] sm:$0xff] }
  0x2b   :  { %v136_v20 = vld [vmem:[%s2812_s1 + $0x348] sm:$0xff]  ;;  %484 = vmatprep.subr.mxu1 %v268_v17  ;;  %v135_v22 = vld [vmem:[%s2812_s1 + $0x340] sm:$0xff]  ;;  %414 = vmatpush2.msra.mxu0 %v139_v18  ;;  %v82_v17 = vld [vmem:[%s2812_s1 + $0x198] sm:$0xff] }
  0x2c   :  { %v264_v21 = vld [vmem:[%s2812_s1 + $0x748] sm:$0xff]  ;;  %v263_v23 = vld [vmem:[%s2812_s1 + $0x740] sm:$0xff]  ;;  %485 = vmatpush2.msra.mxu1 %v267_v19  ;;  %415 = vmatprep.subr.mxu0 %v136_v20  ;;  %v81_v19 = vld [vmem:[%s2812_s1 + $0x190] sm:$0xff] }
  0x2d   :  { %v132_v24 = vld [vmem:[%s2812_s1 + $0x328] sm:$0xff]  ;;  %486 = vmatprep.subr.mxu1 %v264_v21  ;;  %v131_v26 = vld [vmem:[%s2812_s1 + $0x320] sm:$0xff]  ;;  %416 = vmatpush2.msra.mxu0 %v135_v22  ;;  %v78_v21 = vld [vmem:[%s2812_s1 + $0x178] sm:$0xff] }
  0x2e   :  { %v260_v25 = vld [vmem:[%s2812_s1 + $0x728] sm:$0xff]  ;;  %v259_v27 = vld [vmem:[%s2812_s1 + $0x720] sm:$0xff]  ;;  %487 = vmatpush2.msra.mxu1 %v263_v23  ;;  %417 = vmatprep.subr.mxu0 %v132_v24  ;;  %v77_v23 = vld [vmem:[%s2812_s1 + $0x170] sm:$0xff] }
  0x2f   :  { %v128_v28 = vld [vmem:[%s2812_s1 + $0x308] sm:$0xff]  ;;  %488 = vmatprep.subr.mxu1 %v260_v25  ;;  %v127_v30 = vld [vmem:[%s2812_s1 + $0x300] sm:$0xff]  ;;  %418 = vmatpush2.msra.mxu0 %v131_v26  ;;  %v74_v25 = vld [vmem:[%s2812_s1 + $0x158] sm:$0xff] }
  0x30   :  { %v256_v29 = vld [vmem:[%s2812_s1 + $0x708] sm:$0xff]  ;;  %v255_v31 = vld [vmem:[%s2812_s1 + $0x700] sm:$0xff]  ;;  %489 = vmatpush2.msra.mxu1 %v259_v27  ;;  %419 = vmatprep.subr.mxu0 %v128_v28  ;;  %v73_v27 = vld [vmem:[%s2812_s1 + $0x150] sm:$0xff] }
  0x31   :  { %v124_v32 = vld [vmem:[%s2812_s1 + $0x2e8] sm:$0xff]  ;;  %490 = vmatprep.subr.mxu1 %v256_v29  ;;  %v123_v34 = vld [vmem:[%s2812_s1 + $0x2e0] sm:$0xff]  ;;  %420 = vmatpush2.msra.mxu0 %v127_v30  ;;  %v70_v29 = vld [vmem:[%s2812_s1 + $0x138] sm:$0xff] }
  0x32   :  { %v252_v33 = vld [vmem:[%s2812_s1 + $0x6e8] sm:$0xff]  ;;  %v251_v35 = vld [vmem:[%s2812_s1 + $0x6e0] sm:$0xff]  ;;  %491 = vmatpush2.msra.mxu1 %v255_v31  ;;  %421 = vmatprep.subr.mxu0 %v124_v32  ;;  %v69_v31 = vld [vmem:[%s2812_s1 + $0x130] sm:$0xff] }
  0x33   :  { %v120_v36 = vld [vmem:[%s2812_s1 + $0x2c8] sm:$0xff]  ;;  %492 = vmatprep.subr.mxu1 %v252_v33  ;;  %v119_v38 = vld [vmem:[%s2812_s1 + $0x2c0] sm:$0xff]  ;;  %422 = vmatpush2.msra.mxu0 %v123_v34  ;;  %v66_v33 = vld [vmem:[%s2812_s1 + $0x118] sm:$0xff] }
  0x34   :  { %v248_v37 = vld [vmem:[%s2812_s1 + $0x6c8] sm:$0xff]  ;;  %v247_v39 = vld [vmem:[%s2812_s1 + $0x6c0] sm:$0xff]  ;;  %493 = vmatpush2.msra.mxu1 %v251_v35  ;;  %423 = vmatprep.subr.mxu0 %v120_v36  ;;  %v65_v35 = vld [vmem:[%s2812_s1 + $0x110] sm:$0xff] }
  0x35   :  { %v116_v40 = vld [vmem:[%s2812_s1 + $0x2a8] sm:$0xff]  ;;  %494 = vmatprep.subr.mxu1 %v248_v37  ;;  %v115_v42 = vld [vmem:[%s2812_s1 + $0x2a0] sm:$0xff]  ;;  %424 = vmatpush2.msra.mxu0 %v119_v38  ;;  %v62_v37 = vld [vmem:[%s2812_s1 + $0xf8] sm:$0xff] }
  0x36   :  { %v244_v41 = vld [vmem:[%s2812_s1 + $0x6a8] sm:$0xff]  ;;  %v243_v43 = vld [vmem:[%s2812_s1 + $0x6a0] sm:$0xff]  ;;  %495 = vmatpush2.msra.mxu1 %v247_v39  ;;  %425 = vmatprep.subr.mxu0 %v116_v40  ;;  %v61_v39 = vld [vmem:[%s2812_s1 + $0xf0] sm:$0xff] }
  0x37   :  { %v112_v44 = vld [vmem:[%s2812_s1 + $0x288] sm:$0xff]  ;;  %496 = vmatprep.subr.mxu1 %v244_v41  ;;  %v111_v46 = vld [vmem:[%s2812_s1 + $0x280] sm:$0xff]  ;;  %426 = vmatpush2.msra.mxu0 %v115_v42  ;;  %v58_v41 = vld [vmem:[%s2812_s1 + $0xd8] sm:$0xff] }
  0x38   :  { %v240_v45 = vld [vmem:[%s2812_s1 + $0x688] sm:$0xff]  ;;  %v239_v47 = vld [vmem:[%s2812_s1 + $0x680] sm:$0xff]  ;;  %497 = vmatpush2.msra.mxu1 %v243_v43  ;;  %427 = vmatprep.subr.mxu0 %v112_v44  ;;  %v57_v43 = vld [vmem:[%s2812_s1 + $0xd0] sm:$0xff] }
  0x39   :  { %v108_v48 = vld [vmem:[%s2812_s1 + $0x268] sm:$0xff]  ;;  %498 = vmatprep.subr.mxu1 %v240_v45  ;;  %v107_v50 = vld [vmem:[%s2812_s1 + $0x260] sm:$0xff]  ;;  %428 = vmatpush2.msra.mxu0 %v111_v46  ;;  %v54_v45 = vld [vmem:[%s2812_s1 + $0xb8] sm:$0xff] }
  0x3a   :  { %v236_v49 = vld [vmem:[%s2812_s1 + $0x668] sm:$0xff]  ;;  %v235_v51 = vld [vmem:[%s2812_s1 + $0x660] sm:$0xff]  ;;  %499 = vmatpush2.msra.mxu1 %v239_v47  ;;  %429 = vmatprep.subr.mxu0 %v108_v48  ;;  %v53_v47 = vld [vmem:[%s2812_s1 + $0xb0] sm:$0xff] }
  0x3b   :  { %v104_v52 = vld [vmem:[%s2812_s1 + $0x248] sm:$0xff]  ;;  %500 = vmatprep.subr.mxu1 %v236_v49  ;;  %v103_v54 = vld [vmem:[%s2812_s1 + $0x240] sm:$0xff]  ;;  %430 = vmatpush2.msra.mxu0 %v107_v50  ;;  %v50_v49 = vld [vmem:[%s2812_s1 + $0x98] sm:$0xff] }
  0x3c   :  { %v232_v53 = vld [vmem:[%s2812_s1 + $0x648] sm:$0xff]  ;;  %v231_v55 = vld [vmem:[%s2812_s1 + $0x640] sm:$0xff]  ;;  %501 = vmatpush2.msra.mxu1 %v235_v51  ;;  %431 = vmatprep.subr.mxu0 %v104_v52  ;;  %v49_v51 = vld [vmem:[%s2812_s1 + $0x90] sm:$0xff] }
  0x3d   :  { %v100_v56 = vld [vmem:[%s2812_s1 + $0x228] sm:$0xff]  ;;  %502 = vmatprep.subr.mxu1 %v232_v53  ;;  %v99_v58 = vld [vmem:[%s2812_s1 + $0x220] sm:$0xff]  ;;  %432 = vmatpush2.msra.mxu0 %v103_v54  ;;  %v46_v53 = vld [vmem:[%s2812_s1 + $0x78] sm:$0xff] }
  0x3e   :  { %v228_v57 = vld [vmem:[%s2812_s1 + $0x628] sm:$0xff]  ;;  %v227_v59 = vld [vmem:[%s2812_s1 + $0x620] sm:$0xff]  ;;  %503 = vmatpush2.msra.mxu1 %v231_v55  ;;  %433 = vmatprep.subr.mxu0 %v100_v56  ;;  %v45_v55 = vld [vmem:[%s2812_s1 + $0x70] sm:$0xff] }
  0x3f   :  { %v96_v60 = vld [vmem:[%s2812_s1 + $0x208] sm:$0xff]  ;;  %504 = vmatprep.subr.mxu1 %v228_v57  ;;  %v95_v62 = vld [vmem:[%s2812_s1 + $0x200] sm:$0xff]  ;;  %434 = vmatpush2.msra.mxu0 %v99_v58  ;;  %v42_v57 = vld [vmem:[%s2812_s1 + $0x58] sm:$0xff] }
  0x40   :  { %v224_v61 = vld [vmem:[%s2812_s1 + $0x608] sm:$0xff]  ;;  %505 = vmatpush2.msra.mxu1 %v227_v59  ;;  %v223_v0 = vld [vmem:[%s2812_s1 + $0x600] sm:$0xff]  ;;  %435 = vmatprep.subr.mxu0 %v96_v60  ;;  %v41_v59 = vld [vmem:[%s2812_s1 + $0x50] sm:$0xff] }
  0x41   :  { %v1693_v63 = vld [vmem:[%s2813_s0 + $0x8] sm:$0xff]  ;;  %v1701_v1 = vld [vmem:[%s2813_s0] sm:$0xff]  ;;  %506 = vmatprep.subr.mxu1 %v224_v61  ;;  %436 = vmatpush2.msra.mxu0 %v95_v62  ;;  %v38_v61 = vld [vmem:[%s2812_s1 + $0x38] sm:$0xff] }
  0x42   :  { %v348_v3 = vld [vmem:[%s2812_s1 + $0x9e8] sm:$0xff]  ;;  %437 = vmatprep.mubr.f32.mxu0 %v1693_v63  ;;  %507 = vmatpush2.msra.mxu1 %v223_v0  ;;  %v347_v6 = vld [vmem:[%s2812_s1 + $0x9e0] sm:$0xff]  ;;  %v37_v0 = vld [vmem:[%s2812_s1 + $0x30] sm:$0xff] }
  0x43   :  { %438 = vmatmul.mubr.f32.vlgmr.msra.gmra.mxu0 %v1701_v1  ;;  %508 = vmatprep.mubr.f32.mxu1 %v1706_v2  ;;  %v344_v8 = vld [vmem:[%s2812_s1 + $0x9c8] sm:$0xff]  ;;  %v343_v10 = vld [vmem:[%s2812_s1 + $0x9c0] sm:$0xff] }
  0x44   :  { %515 = vmatprep.subr.mxu0 %v348_v3  ;;  %586 = vmatprep.subr.mxu1 %v94_v4  ;;  %v340_v12 = vld [vmem:[%s2812_s1 + $0x9a8] sm:$0xff]  ;;  %v339_v14 = vld [vmem:[%s2812_s1 + $0x9a0] sm:$0xff]  ;;  %v34_v4 = vld [vmem:[%s2812_s1 + $0x18] sm:$0xff] }
  0x45   :  { %509 = vmatmul.mubr.f32.vlgmr.msra.gmra.mxu1 %v1718_v5  ;;  %516 = vmatpush1.msra.mxu0 %v347_v6  ;;  %v336_v16 = vld [vmem:[%s2812_s1 + $0x988] sm:$0xff]  ;;  %v335_v18 = vld [vmem:[%s2812_s1 + $0x980] sm:$0xff] }
  0x46   :  { %587 = vmatpush1.msra.mxu1 %v93_v7  ;;  %517 = vmatprep.subr.mxu0 %v344_v8  ;;  %v332_v20 = vld [vmem:[%s2812_s1 + $0x968] sm:$0xff]  ;;  %v331_v22 = vld [vmem:[%s2812_s1 + $0x960] sm:$0xff]  ;;  %v33_v7 = vld [vmem:[%s2812_s1 + $0x10] sm:$0xff] }
  0x47   :  { %588 = vmatprep.subr.mxu1 %v90_v9  ;;  %518 = vmatpush1.msra.mxu0 %v343_v10  ;;  %v328_v24 = vld [vmem:[%s2812_s1 + $0x948] sm:$0xff]  ;;  %v327_v26 = vld [vmem:[%s2812_s1 + $0x940] sm:$0xff]  ;;  %v158_v9 = vld [vmem:[%s2812_s1 + $0x3f8] sm:$0xff] }
  0x48   :  { %589 = vmatpush1.msra.mxu1 %v89_v11  ;;  %519 = vmatprep.subr.mxu0 %v340_v12  ;;  %v324_v28 = vld [vmem:[%s2812_s1 + $0x928] sm:$0xff]  ;;  %v323_v30 = vld [vmem:[%s2812_s1 + $0x920] sm:$0xff]  ;;  %v222_v10 = vld [vmem:[%s2812_s1 + $0x5f8] sm:$0xff]  ;;  %v1268_v11 = vmov 0.0  }
  0x49   :  { %590 = vmatprep.subr.mxu1 %v86_v13  ;;  %520 = vmatpush1.msra.mxu0 %v339_v14  ;;  %v320_v32 = vld [vmem:[%s2812_s1 + $0x908] sm:$0xff]  ;;  %v319_v34 = vld [vmem:[%s2812_s1 + $0x900] sm:$0xff]  ;;  %v157_v12 = vld [vmem:[%s2812_s1 + $0x3f0] sm:$0xff] }
  0x4a   :  { %591 = vmatpush1.msra.mxu1 %v85_v15  ;;  %521 = vmatprep.subr.mxu0 %v336_v16  ;;  %v316_v36 = vld [vmem:[%s2812_s1 + $0x8e8] sm:$0xff]  ;;  %v315_v38 = vld [vmem:[%s2812_s1 + $0x8e0] sm:$0xff]  ;;  %v221_v13 = vld [vmem:[%s2812_s1 + $0x5f0] sm:$0xff] }
  0x4b   :  { %592 = vmatprep.subr.mxu1 %v82_v17  ;;  %522 = vmatpush1.msra.mxu0 %v335_v18  ;;  %v312_v40 = vld [vmem:[%s2812_s1 + $0x8c8] sm:$0xff]  ;;  %v311_v42 = vld [vmem:[%s2812_s1 + $0x8c0] sm:$0xff]  ;;  %v154_v14 = vld [vmem:[%s2812_s1 + $0x3d8] sm:$0xff] }
  0x4c   :  { %593 = vmatpush1.msra.mxu1 %v81_v19  ;;  %523 = vmatprep.subr.mxu0 %v332_v20  ;;  %v308_v44 = vld [vmem:[%s2812_s1 + $0x8a8] sm:$0xff]  ;;  %v307_v46 = vld [vmem:[%s2812_s1 + $0x8a0] sm:$0xff]  ;;  %v218_v15 = vld [vmem:[%s2812_s1 + $0x5d8] sm:$0xff] }
  0x4d   :  { %594 = vmatprep.subr.mxu1 %v78_v21  ;;  %524 = vmatpush1.msra.mxu0 %v331_v22  ;;  %v304_v48 = vld [vmem:[%s2812_s1 + $0x888] sm:$0xff]  ;;  %v303_v50 = vld [vmem:[%s2812_s1 + $0x880] sm:$0xff]  ;;  %v153_v16 = vld [vmem:[%s2812_s1 + $0x3d0] sm:$0xff] }
  0x4e   :  { %595 = vmatpush1.msra.mxu1 %v77_v23  ;;  %525 = vmatprep.subr.mxu0 %v328_v24  ;;  %v300_v52 = vld [vmem:[%s2812_s1 + $0x868] sm:$0xff]  ;;  %v299_v54 = vld [vmem:[%s2812_s1 + $0x860] sm:$0xff]  ;;  %v217_v17 = vld [vmem:[%s2812_s1 + $0x5d0] sm:$0xff] }
  0x4f   :  { %596 = vmatprep.subr.mxu1 %v74_v25  ;;  %526 = vmatpush1.msra.mxu0 %v327_v26  ;;  %v296_v56 = vld [vmem:[%s2812_s1 + $0x848] sm:$0xff]  ;;  %v295_v58 = vld [vmem:[%s2812_s1 + $0x840] sm:$0xff]  ;;  %v150_v18 = vld [vmem:[%s2812_s1 + $0x3b8] sm:$0xff] }
  0x50   :  { %597 = vmatpush1.msra.mxu1 %v73_v27  ;;  %527 = vmatprep.subr.mxu0 %v324_v28  ;;  %v292_v60 = vld [vmem:[%s2812_s1 + $0x828] sm:$0xff]  ;;  %v291_v62 = vld [vmem:[%s2812_s1 + $0x820] sm:$0xff]  ;;  %v214_v19 = vld [vmem:[%s2812_s1 + $0x5b8] sm:$0xff] }
  0x51   :  { %598 = vmatprep.subr.mxu1 %v70_v29  ;;  %528 = vmatpush1.msra.mxu0 %v323_v30  ;;  %v288_v3 = vld [vmem:[%s2812_s1 + $0x808] sm:$0xff]  ;;  %v287_v6 = vld [vmem:[%s2812_s1 + $0x800] sm:$0xff]  ;;  %v149_v20 = vld [vmem:[%s2812_s1 + $0x3b0] sm:$0xff] }
  0x52   :  { %599 = vmatpush1.msra.mxu1 %v69_v31  ;;  %529 = vmatprep.subr.mxu0 %v320_v32  ;;  %v1912_v8 = vld [vmem:[%s2813_s0 + $0x20] sm:$0xff]  ;;  %v213_v21 = vld [vmem:[%s2812_s1 + $0x5b0] sm:$0xff]  ;;  %v146_v22 = vld [vmem:[%s2812_s1 + $0x398] sm:$0xff] }
  0x53   :  { %600 = vmatprep.subr.mxu1 %v66_v33  ;;  %530 = vmatpush1.msra.mxu0 %v319_v34  ;;  %v210_v23 = vld [vmem:[%s2812_s1 + $0x598] sm:$0xff]  ;;  %v145_v24 = vld [vmem:[%s2812_s1 + $0x390] sm:$0xff] }
  0x54   :  { %601 = vmatpush1.msra.mxu1 %v65_v35  ;;  %531 = vmatprep.subr.mxu0 %v316_v36  ;;  %v209_v25 = vld [vmem:[%s2812_s1 + $0x590] sm:$0xff]  ;;  %v142_v26 = vld [vmem:[%s2812_s1 + $0x378] sm:$0xff] }
  0x55   :  { %602 = vmatprep.subr.mxu1 %v62_v37  ;;  %532 = vmatpush1.msra.mxu0 %v315_v38  ;;  %v206_v27 = vld [vmem:[%s2812_s1 + $0x578] sm:$0xff]  ;;  %v141_v28 = vld [vmem:[%s2812_s1 + $0x370] sm:$0xff] }
  0x56   :  { %603 = vmatpush1.msra.mxu1 %v61_v39  ;;  %533 = vmatprep.subr.mxu0 %v312_v40  ;;  %v205_v29 = vld [vmem:[%s2812_s1 + $0x570] sm:$0xff]  ;;  %v138_v30 = vld [vmem:[%s2812_s1 + $0x358] sm:$0xff] }
  0x57   :  { %604 = vmatprep.subr.mxu1 %v58_v41  ;;  %534 = vmatpush1.msra.mxu0 %v311_v42  ;;  %v202_v31 = vld [vmem:[%s2812_s1 + $0x558] sm:$0xff]  ;;  %v137_v32 = vld [vmem:[%s2812_s1 + $0x350] sm:$0xff] }
  0x58   :  { %605 = vmatpush1.msra.mxu1 %v57_v43  ;;  %535 = vmatprep.subr.mxu0 %v308_v44  ;;  %v201_v33 = vld [vmem:[%s2812_s1 + $0x550] sm:$0xff]  ;;  %v134_v34 = vld [vmem:[%s2812_s1 + $0x338] sm:$0xff] }
  0x59   :  { %606 = vmatprep.subr.mxu1 %v54_v45  ;;  %536 = vmatpush1.msra.mxu0 %v307_v46  ;;  %v198_v35 = vld [vmem:[%s2812_s1 + $0x538] sm:$0xff]  ;;  %v133_v36 = vld [vmem:[%s2812_s1 + $0x330] sm:$0xff] }
  0x5a   :  { %607 = vmatpush1.msra.mxu1 %v53_v47  ;;  %537 = vmatprep.subr.mxu0 %v304_v48  ;;  %v197_v37 = vld [vmem:[%s2812_s1 + $0x530] sm:$0xff]  ;;  %v130_v38 = vld [vmem:[%s2812_s1 + $0x318] sm:$0xff] }
  0x5b   :  { %608 = vmatprep.subr.mxu1 %v50_v49  ;;  %538 = vmatpush1.msra.mxu0 %v303_v50  ;;  %v194_v39 = vld [vmem:[%s2812_s1 + $0x518] sm:$0xff]  ;;  %v129_v40 = vld [vmem:[%s2812_s1 + $0x310] sm:$0xff] }
  0x5c   :  { %609 = vmatpush1.msra.mxu1 %v49_v51  ;;  %539 = vmatprep.subr.mxu0 %v300_v52  ;;  %v193_v41 = vld [vmem:[%s2812_s1 + $0x510] sm:$0xff]  ;;  %v126_v42 = vld [vmem:[%s2812_s1 + $0x2f8] sm:$0xff] }
  0x5d   :  { %610 = vmatprep.subr.mxu1 %v46_v53  ;;  %540 = vmatpush1.msra.mxu0 %v299_v54  ;;  %v190_v43 = vld [vmem:[%s2812_s1 + $0x4f8] sm:$0xff]  ;;  %v125_v44 = vld [vmem:[%s2812_s1 + $0x2f0] sm:$0xff] }
  0x5e   :  { %611 = vmatpush1.msra.mxu1 %v45_v55  ;;  %541 = vmatprep.subr.mxu0 %v296_v56  ;;  %v189_v45 = vld [vmem:[%s2812_s1 + $0x4f0] sm:$0xff]  ;;  %v122_v46 = vld [vmem:[%s2812_s1 + $0x2d8] sm:$0xff] }
  0x5f   :  { %612 = vmatprep.subr.mxu1 %v42_v57  ;;  %542 = vmatpush1.msra.mxu0 %v295_v58  ;;  %v186_v47 = vld [vmem:[%s2812_s1 + $0x4d8] sm:$0xff]  ;;  %v121_v48 = vld [vmem:[%s2812_s1 + $0x2d0] sm:$0xff] }
  0x60   :  { %613 = vmatpush1.msra.mxu1 %v41_v59  ;;  %543 = vmatprep.subr.mxu0 %v292_v60  ;;  %v185_v49 = vld [vmem:[%s2812_s1 + $0x4d0] sm:$0xff]  ;;  %v118_v50 = vld [vmem:[%s2812_s1 + $0x2b8] sm:$0xff] }
  0x61   :  { %614 = vmatprep.subr.mxu1 %v38_v61  ;;  %544 = vmatpush1.msra.mxu0 %v291_v62  ;;  %v182_v51 = vld [vmem:[%s2812_s1 + $0x4b8] sm:$0xff]  ;;  %v117_v52 = vld [vmem:[%s2812_s1 + $0x2b0] sm:$0xff] }
  0x62   :  { %615 = vmatpush1.msra.mxu1 %v37_v0  ;;  %545 = vmatprep.subr.mxu0 %v288_v3  ;;  %v181_v53 = vld [vmem:[%s2812_s1 + $0x4b0] sm:$0xff]  ;;  %v114_v54 = vld [vmem:[%s2812_s1 + $0x298] sm:$0xff] }
  0x63   :  { %616 = vmatprep.subr.mxu1 %v34_v4  ;;  %546 = vmatpush1.msra.mxu0 %v287_v6  ;;  %v178_v55 = vld [vmem:[%s2812_s1 + $0x498] sm:$0xff]  ;;  %v113_v56 = vld [vmem:[%s2812_s1 + $0x290] sm:$0xff] }
  0x64   :  { %579 = vmatprep.mubr.f32.mxu0 %v1268_v11  ;;  %617 = vmatpush1.msra.mxu1 %v33_v7  ;;  %v177_v57 = vld [vmem:[%s2812_s1 + $0x490] sm:$0xff]  ;;  %v110_v58 = vld [vmem:[%s2812_s1 + $0x278] sm:$0xff] }
  0x65   :  { %580 = vmatmul.mubr.f32.vlgmr.msra.gmra.mxu0 %v1912_v8  ;;  %618 = vmatprep.subr.mxu1 %v158_v9  ;;  %v174_v59 = vld [vmem:[%s2812_s1 + $0x478] sm:$0xff]  ;;  %v109_v60 = vld [vmem:[%s2812_s1 + $0x270] sm:$0xff] }
  0x66   :  { %657 = vmatprep.subr.mxu0 %v222_v10  ;;  %619 = vmatpush2.msra.mxu1 %v157_v12  ;;  %v173_v61 = vld [vmem:[%s2812_s1 + $0x470] sm:$0xff]  ;;  %v106_v62 = vld [vmem:[%s2812_s1 + $0x258] sm:$0xff] }
  0x67   :  { %658 = vmatpush1.msra.mxu0 %v221_v13  ;;  %620 = vmatprep.subr.mxu1 %v154_v14  ;;  %v170_v0 = vld [vmem:[%s2812_s1 + $0x458] sm:$0xff]  ;;  %v105_v3 = vld [vmem:[%s2812_s1 + $0x250] sm:$0xff] }
  0x68   :  { %659 = vmatprep.subr.mxu0 %v218_v15  ;;  %621 = vmatpush2.msra.mxu1 %v153_v16  ;;  %v169_v4 = vld [vmem:[%s2812_s1 + $0x450] sm:$0xff]  ;;  %v102_v6 = vld [vmem:[%s2812_s1 + $0x238] sm:$0xff] }
  0x69   :  { %660 = vmatpush1.msra.mxu0 %v217_v17  ;;  %622 = vmatprep.subr.mxu1 %v150_v18  ;;  %v166_v7 = vld [vmem:[%s2812_s1 + $0x438] sm:$0xff]  ;;  %v101_v9 = vld [vmem:[%s2812_s1 + $0x230] sm:$0xff] }
  0x6a   :  { %661 = vmatprep.subr.mxu0 %v214_v19  ;;  %623 = vmatpush2.msra.mxu1 %v149_v20  ;;  %v165_v10 = vld [vmem:[%s2812_s1 + $0x430] sm:$0xff]  ;;  %v98_v12 = vld [vmem:[%s2812_s1 + $0x218] sm:$0xff] }
  0x6b   :  { %662 = vmatpush1.msra.mxu0 %v213_v21  ;;  %624 = vmatprep.subr.mxu1 %v146_v22  ;;  %v162_v13 = vld [vmem:[%s2812_s1 + $0x418] sm:$0xff]  ;;  %v97_v14 = vld [vmem:[%s2812_s1 + $0x210] sm:$0xff] }
  0x6c   :  { %663 = vmatprep.subr.mxu0 %v210_v23  ;;  %625 = vmatpush2.msra.mxu1 %v145_v24  ;;  %v161_v15 = vld [vmem:[%s2812_s1 + $0x410] sm:$0xff]  ;;  %v286_v16 = vld [vmem:[%s2812_s1 + $0x7f8] sm:$0xff] }
  0x6d   :  { %664 = vmatpush1.msra.mxu0 %v209_v25  ;;  %626 = vmatprep.subr.mxu1 %v142_v26  ;;  %v350_v17 = vld [vmem:[%s2812_s1 + $0x9f8] sm:$0xff]  ;;  %v285_v18 = vld [vmem:[%s2812_s1 + $0x7f0] sm:$0xff] }
  0x6e   :  { %665 = vmatprep.subr.mxu0 %v206_v27  ;;  %627 = vmatpush2.msra.mxu1 %v141_v28  ;;  %v349_v19 = vld [vmem:[%s2812_s1 + $0x9f0] sm:$0xff]  ;;  %v282_v20 = vld [vmem:[%s2812_s1 + $0x7d8] sm:$0xff] }
  0x6f   :  { %666 = vmatpush1.msra.mxu0 %v205_v29  ;;  %628 = vmatprep.subr.mxu1 %v138_v30  ;;  %v346_v21 = vld [vmem:[%s2812_s1 + $0x9d8] sm:$0xff]  ;;  %v281_v22 = vld [vmem:[%s2812_s1 + $0x7d0] sm:$0xff] }
  0x70   :  { %667 = vmatprep.subr.mxu0 %v202_v31  ;;  %629 = vmatpush2.msra.mxu1 %v137_v32  ;;  %v278_v23 = vld [vmem:[%s2812_s1 + $0x7b8] sm:$0xff]  ;;  %v341_v25 = vld [vmem:[%s2812_s1 + $0x9b0] sm:$0xff] }
  0x71   :  { %668 = vmatpush1.msra.mxu0 %v201_v33  ;;  %630 = vmatprep.subr.mxu1 %v134_v34  ;;  %v342_v24 = vld [vmem:[%s2812_s1 + $0x9b8] sm:$0xff]  ;;  %v273_v28 = vld [vmem:[%s2812_s1 + $0x790] sm:$0xff] }
  0x72   :  { %669 = vmatprep.subr.mxu0 %v198_v35  ;;  %631 = vmatpush2.msra.mxu1 %v133_v36  ;;  %v274_v26 = vld [vmem:[%s2812_s1 + $0x798] sm:$0xff]  ;;  %v337_v29 = vld [vmem:[%s2812_s1 + $0x990] sm:$0xff] }
  0x73   :  { %670 = vmatpush1.msra.mxu0 %v197_v37  ;;  %632 = vmatprep.subr.mxu1 %v130_v38  ;;  %v338_v27 = vld [vmem:[%s2812_s1 + $0x998] sm:$0xff]  ;;  %v269_v32 = vld [vmem:[%s2812_s1 + $0x770] sm:$0xff] }
  0x74   :  { %671 = vmatprep.subr.mxu0 %v194_v39  ;;  %633 = vmatpush2.msra.mxu1 %v129_v40  ;;  %v270_v30 = vld [vmem:[%s2812_s1 + $0x778] sm:$0xff]  ;;  %v333_v33 = vld [vmem:[%s2812_s1 + $0x970] sm:$0xff] }
  0x75   :  { %672 = vmatpush1.msra.mxu0 %v193_v41  ;;  %634 = vmatprep.subr.mxu1 %v126_v42  ;;  %v334_v31 = vld [vmem:[%s2812_s1 + $0x978] sm:$0xff]  ;;  %v265_v36 = vld [vmem:[%s2812_s1 + $0x750] sm:$0xff] }
  0x76   :  { %673 = vmatprep.subr.mxu0 %v190_v43  ;;  %635 = vmatpush2.msra.mxu1 %v125_v44  ;;  %v266_v34 = vld [vmem:[%s2812_s1 + $0x758] sm:$0xff]  ;;  %v329_v37 = vld [vmem:[%s2812_s1 + $0x950] sm:$0xff] }
  0x77   :  { %674 = vmatpush1.msra.mxu0 %v189_v45  ;;  %636 = vmatprep.subr.mxu1 %v122_v46  ;;  %v330_v35 = vld [vmem:[%s2812_s1 + $0x958] sm:$0xff]  ;;  %v261_v40 = vld [vmem:[%s2812_s1 + $0x730] sm:$0xff] }
  0x78   :  { %675 = vmatprep.subr.mxu0 %v186_v47  ;;  %637 = vmatpush2.msra.mxu1 %v121_v48  ;;  %v262_v38 = vld [vmem:[%s2812_s1 + $0x738] sm:$0xff]  ;;  %v325_v41 = vld [vmem:[%s2812_s1 + $0x930] sm:$0xff] }
  0x79   :  { %676 = vmatpush1.msra.mxu0 %v185_v49  ;;  %638 = vmatprep.subr.mxu1 %v118_v50  ;;  %v326_v39 = vld [vmem:[%s2812_s1 + $0x938] sm:$0xff]  ;;  %v257_v44 = vld [vmem:[%s2812_s1 + $0x710] sm:$0xff] }
  0x7a   :  { %677 = vmatprep.subr.mxu0 %v182_v51  ;;  %639 = vmatpush2.msra.mxu1 %v117_v52  ;;  %v258_v42 = vld [vmem:[%s2812_s1 + $0x718] sm:$0xff]  ;;  %v321_v45 = vld [vmem:[%s2812_s1 + $0x910] sm:$0xff] }
  0x7b   :  { %678 = vmatpush1.msra.mxu0 %v181_v53  ;;  %640 = vmatprep.subr.mxu1 %v114_v54  ;;  %v322_v43 = vld [vmem:[%s2812_s1 + $0x918] sm:$0xff]  ;;  %v253_v48 = vld [vmem:[%s2812_s1 + $0x6f0] sm:$0xff] }
  0x7c   :  { %679 = vmatprep.subr.mxu0 %v178_v55  ;;  %641 = vmatpush2.msra.mxu1 %v113_v56  ;;  %v254_v46 = vld [vmem:[%s2812_s1 + $0x6f8] sm:$0xff]  ;;  %v317_v49 = vld [vmem:[%s2812_s1 + $0x8f0] sm:$0xff] }
  0x7d   :  { %680 = vmatpush1.msra.mxu0 %v177_v57  ;;  %642 = vmatprep.subr.mxu1 %v110_v58  ;;  %v318_v47 = vld [vmem:[%s2812_s1 + $0x8f8] sm:$0xff]  ;;  %v249_v52 = vld [vmem:[%s2812_s1 + $0x6d0] sm:$0xff] }
  0x7e   :  { %681 = vmatprep.subr.mxu0 %v174_v59  ;;  %643 = vmatpush2.msra.mxu1 %v109_v60  ;;  %v250_v50 = vld [vmem:[%s2812_s1 + $0x6d8] sm:$0xff]  ;;  %v313_v53 = vld [vmem:[%s2812_s1 + $0x8d0] sm:$0xff] }
  0x7f   :  { %682 = vmatpush1.msra.mxu0 %v173_v61  ;;  %644 = vmatprep.subr.mxu1 %v106_v62  ;;  %v314_v51 = vld [vmem:[%s2812_s1 + $0x8d8] sm:$0xff]  ;;  %v245_v56 = vld [vmem:[%s2812_s1 + $0x6b0] sm:$0xff] }
  0x80   :  { %683 = vmatprep.subr.mxu0 %v170_v0  ;;  %645 = vmatpush2.msra.mxu1 %v105_v3  ;;  %v246_v54 = vld [vmem:[%s2812_s1 + $0x6b8] sm:$0xff]  ;;  %v309_v57 = vld [vmem:[%s2812_s1 + $0x8b0] sm:$0xff] }
  0x81   :  { %684 = vmatpush1.msra.mxu0 %v169_v4  ;;  %646 = vmatprep.subr.mxu1 %v102_v6  ;;  %v310_v55 = vld [vmem:[%s2812_s1 + $0x8b8] sm:$0xff]  ;;  %v241_v60 = vld [vmem:[%s2812_s1 + $0x690] sm:$0xff] }
  0x82   :  { %685 = vmatprep.subr.mxu0 %v166_v7  ;;  %647 = vmatpush2.msra.mxu1 %v101_v9  ;;  %v242_v58 = vld [vmem:[%s2812_s1 + $0x698] sm:$0xff]  ;;  %v305_v61 = vld [vmem:[%s2812_s1 + $0x890] sm:$0xff] }
  0x83   :  { %686 = vmatpush1.msra.mxu0 %v165_v10  ;;  %648 = vmatprep.subr.mxu1 %v98_v12  ;;  %v306_v59 = vld [vmem:[%s2812_s1 + $0x898] sm:$0xff]  ;;  %v237_v3 = vld [vmem:[%s2812_s1 + $0x670] sm:$0xff] }
  0x84   :  { %687 = vmatprep.subr.mxu0 %v162_v13  ;;  %649 = vmatpush2.msra.mxu1 %v97_v14  ;;  %v238_v62 = vld [vmem:[%s2812_s1 + $0x678] sm:$0xff]  ;;  %v301_v4 = vld [vmem:[%s2812_s1 + $0x870] sm:$0xff] }
  0x85   :  { %688 = vmatpush1.msra.mxu0 %v161_v15  ;;  %650 = vmatprep.mubr.f32.mxu1 %v1693_v63  ;;  %v345_v63 = vld [vmem:[%s2812_s1 + $0x9d0] sm:$0xff]  ;;  %v302_v0 = vld [vmem:[%s2812_s1 + $0x878] sm:$0xff] }
  0x86   :  { %689 = vmatprep.subr.mxu0 %v286_v16  ;;  %728 = vmatprep.subr.mxu1 %v350_v17  ;;  %v234_v6 = vld [vmem:[%s2812_s1 + $0x658] sm:$0xff]  ;;  %v233_v9 = vld [vmem:[%s2812_s1 + $0x650] sm:$0xff] }
  0x87   :  { %651 = vmatmul.mubr.f32.vlgmr.msra.gmra.mxu1 %v1701_v1  ;;  %690 = vmatpush2.msra.mxu0 %v285_v18  ;;  %v277_v1 = vld [vmem:[%s2812_s1 + $0x7b0] sm:$0xff]  ;;  %v298_v7 = vld [vmem:[%s2812_s1 + $0x858] sm:$0xff] }
  0x88   :  { %729 = vmatpush1.msra.mxu1 %v349_v19  ;;  %691 = vmatprep.subr.mxu0 %v282_v20  ;;  %v297_v10 = vld [vmem:[%s2812_s1 + $0x850] sm:$0xff]  ;;  %v230_v12 = vld [vmem:[%s2812_s1 + $0x638] sm:$0xff] }
  0x89   :  { %730 = vmatprep.subr.mxu1 %v346_v21  ;;  %692 = vmatpush2.msra.mxu0 %v281_v22  ;;  %v294_v13 = vld [vmem:[%s2812_s1 + $0x838] sm:$0xff]  ;;  %v229_v14 = vld [vmem:[%s2812_s1 + $0x630] sm:$0xff]  ;;  %v832_v22 = vld [vmem:[%s2814_s3 + $0xe8] sm:$0xff] }
  0x8a   :  { %731 = vmatpush1.msra.mxu1 %v345_v63  ;;  %693 = vmatprep.subr.mxu0 %v278_v23  ;;  %v293_v15 = vld [vmem:[%s2812_s1 + $0x830] sm:$0xff]  ;;  %v226_v16 = vld [vmem:[%s2812_s1 + $0x618] sm:$0xff]  ;;  %v827_v63 = vld [vmem:[%s2814_s3 + $0xc0] sm:$0xff] }
  0x8b   :  { %732 = vmatprep.subr.mxu1 %v342_v24  ;;  %694 = vmatpush2.msra.mxu0 %v277_v1  ;;  %v290_v17 = vld [vmem:[%s2812_s1 + $0x818] sm:$0xff]  ;;  %v225_v18 = vld [vmem:[%s2812_s1 + $0x610] sm:$0xff]  ;;  %v896_v1 = vld [vmem:[%s2814_s3 + $0x2e8] sm:$0xff] }
  0x8c   :  { %733 = vmatpush1.msra.mxu1 %v341_v25  ;;  %695 = vmatprep.subr.mxu0 %v274_v26  ;;  %v289_v19 = vld [vmem:[%s2812_s1 + $0x810] sm:$0xff]  ;;  %v834_v20 = vld [vmem:[%s2814_s3 + $0xf8] sm:$0xff]  ;;  %v895_v26 = vld [vmem:[%s2814_s3 + $0x2e0] sm:$0xff] }
  0x8d   :  { %734 = vmatprep.subr.mxu1 %v338_v27  ;;  %696 = vmatpush2.msra.mxu0 %v273_v28  ;;  %v833_v21 = vld [vmem:[%s2814_s3 + $0xf0] sm:$0xff]  ;;  %v898_v23 = vld [vmem:[%s2814_s3 + $0x2f8] sm:$0xff] }
  0x8e   :  { %735 = vmatpush1.msra.mxu1 %v337_v29  ;;  %697 = vmatprep.subr.mxu0 %v270_v30  ;;  %v897_v24 = vld [vmem:[%s2814_s3 + $0x2f0] sm:$0xff]  ;;  %v826_v25 = vld [vmem:[%s2814_s3 + $0xb8] sm:$0xff]  ;;  %v824_v29 = vld [vmem:[%s2814_s3 + $0xa8] sm:$0xff] }
  0x8f   :  { %736 = vmatprep.subr.mxu1 %v334_v31  ;;  %698 = vmatpush2.msra.mxu0 %v269_v32  ;;  %v825_v27 = vld [vmem:[%s2814_s3 + $0xb0] sm:$0xff]  ;;  %v894_v28 = vld [vmem:[%s2814_s3 + $0x2d8] sm:$0xff]  ;;  %v823_v31 = vld [vmem:[%s2814_s3 + $0xa0] sm:$0xff] }
  0x90   :  { %737 = vmatpush1.msra.mxu1 %v333_v33  ;;  %699 = vmatprep.subr.mxu0 %v266_v34  ;;  %v893_v30 = vld [vmem:[%s2814_s3 + $0x2d0] sm:$0xff]  ;;  %v892_v32 = vld [vmem:[%s2814_s3 + $0x2c8] sm:$0xff]  ;;  %v822_v33 = vld [vmem:[%s2814_s3 + $0x98] sm:$0xff] }
  0x91   :  { %738 = vmatprep.subr.mxu1 %v330_v35  ;;  %700 = vmatpush2.msra.mxu0 %v265_v36  ;;  %v891_v34 = vld [vmem:[%s2814_s3 + $0x2c0] sm:$0xff]  ;;  %v821_v35 = vld [vmem:[%s2814_s3 + $0x90] sm:$0xff]  ;;  %v890_v36 = vld [vmem:[%s2814_s3 + $0x2b8] sm:$0xff] }
  0x92   :  { %739 = vmatpush1.msra.mxu1 %v329_v37  ;;  %701 = vmatprep.subr.mxu0 %v262_v38  ;;  %v820_v37 = vld [vmem:[%s2814_s3 + $0x88] sm:$0xff]  ;;  %v889_v38 = vld [vmem:[%s2814_s3 + $0x2b0] sm:$0xff] }
  0x93   :  { %740 = vmatprep.subr.mxu1 %v326_v39  ;;  %702 = vmatpush2.msra.mxu0 %v261_v40  ;;  %v819_v39 = vld [vmem:[%s2814_s3 + $0x80] sm:$0xff]  ;;  %v888_v40 = vld [vmem:[%s2814_s3 + $0x2a8] sm:$0xff] }
  0x94   :  { %741 = vmatpush1.msra.mxu1 %v325_v41  ;;  %703 = vmatprep.subr.mxu0 %v258_v42  ;;  %v818_v41 = vld [vmem:[%s2814_s3 + $0x78] sm:$0xff]  ;;  %v887_v42 = vld [vmem:[%s2814_s3 + $0x2a0] sm:$0xff] }
  0x95   :  { %742 = vmatprep.subr.mxu1 %v322_v43  ;;  %704 = vmatpush2.msra.mxu0 %v257_v44  ;;  %v817_v43 = vld [vmem:[%s2814_s3 + $0x70] sm:$0xff]  ;;  %v886_v44 = vld [vmem:[%s2814_s3 + $0x298] sm:$0xff] }
  0x96   :  { %743 = vmatpush1.msra.mxu1 %v321_v45  ;;  %705 = vmatprep.subr.mxu0 %v254_v46  ;;  %v816_v45 = vld [vmem:[%s2814_s3 + $0x68] sm:$0xff]  ;;  %v885_v46 = vld [vmem:[%s2814_s3 + $0x290] sm:$0xff] }
  0x97   :  { %744 = vmatprep.subr.mxu1 %v318_v47  ;;  %706 = vmatpush2.msra.mxu0 %v253_v48  ;;  %v815_v47 = vld [vmem:[%s2814_s3 + $0x60] sm:$0xff]  ;;  %v884_v48 = vld [vmem:[%s2814_s3 + $0x288] sm:$0xff] }
  0x98   :  { %745 = vmatpush1.msra.mxu1 %v317_v49  ;;  %707 = vmatprep.subr.mxu0 %v250_v50  ;;  %v814_v49 = vld [vmem:[%s2814_s3 + $0x58] sm:$0xff]  ;;  %v883_v50 = vld [vmem:[%s2814_s3 + $0x280] sm:$0xff] }
  0x99   :  { %746 = vmatprep.subr.mxu1 %v314_v51  ;;  %708 = vmatpush2.msra.mxu0 %v249_v52  ;;  %v813_v51 = vld [vmem:[%s2814_s3 + $0x50] sm:$0xff]  ;;  %v882_v52 = vld [vmem:[%s2814_s3 + $0x278] sm:$0xff] }
  0x9a   :  { %747 = vmatpush1.msra.mxu1 %v313_v53  ;;  %709 = vmatprep.subr.mxu0 %v246_v54  ;;  %v812_v53 = vld [vmem:[%s2814_s3 + $0x48] sm:$0xff]  ;;  %v881_v54 = vld [vmem:[%s2814_s3 + $0x270] sm:$0xff] }
  0x9b   :  { %748 = vmatprep.subr.mxu1 %v310_v55  ;;  %710 = vmatpush2.msra.mxu0 %v245_v56  ;;  %v811_v55 = vld [vmem:[%s2814_s3 + $0x40] sm:$0xff]  ;;  %v880_v56 = vld [vmem:[%s2814_s3 + $0x268] sm:$0xff] }
  0x9c   :  { %749 = vmatpush1.msra.mxu1 %v309_v57  ;;  %711 = vmatprep.subr.mxu0 %v242_v58  ;;  %v810_v57 = vld [vmem:[%s2814_s3 + $0x38] sm:$0xff]  ;;  %v879_v58 = vld [vmem:[%s2814_s3 + $0x260] sm:$0xff] }
  0x9d   :  { %750 = vmatprep.subr.mxu1 %v306_v59  ;;  %712 = vmatpush2.msra.mxu0 %v241_v60  ;;  %v809_v59 = vld [vmem:[%s2814_s3 + $0x30] sm:$0xff]  ;;  %v878_v60 = vld [vmem:[%s2814_s3 + $0x258] sm:$0xff] }
  0x9e   :  { %751 = vmatpush1.msra.mxu1 %v305_v61  ;;  %713 = vmatprep.subr.mxu0 %v238_v62  ;;  %v808_v61 = vld [vmem:[%s2814_s3 + $0x28] sm:$0xff]  ;;  %v877_v62 = vld [vmem:[%s2814_s3 + $0x250] sm:$0xff] }
  0x9f   :  { %752 = vmatprep.subr.mxu1 %v302_v0  ;;  %714 = vmatpush2.msra.mxu0 %v237_v3  ;;  %v807_v0 = vld [vmem:[%s2814_s3 + $0x20] sm:$0xff]  ;;  %v876_v3 = vld [vmem:[%s2814_s3 + $0x248] sm:$0xff] }
  0xa0   :  { %753 = vmatpush1.msra.mxu1 %v301_v4  ;;  %715 = vmatprep.subr.mxu0 %v234_v6  ;;  %v806_v4 = vld [vmem:[%s2814_s3 + $0x18] sm:$0xff]  ;;  %v805_v6 = vld [vmem:[%s2814_s3 + $0x10] sm:$0xff] }
  0xa1   :  { %754 = vmatprep.subr.mxu1 %v298_v7  ;;  %716 = vmatpush2.msra.mxu0 %v233_v9  ;;  %v804_v7 = vld [vmem:[%s2814_s3 + $0x8] sm:$0xff]  ;;  %v803_v9 = vld [vmem:[%s2814_s3] sm:$0xff] }
  0xa2   :  { %755 = vmatpush1.msra.mxu1 %v297_v10  ;;  %717 = vmatprep.subr.mxu0 %v230_v12  ;;  %v866_v10 = vld [vmem:[%s2814_s3 + $0x1f8] sm:$0xff]  ;;  %v865_v12 = vld [vmem:[%s2814_s3 + $0x1f0] sm:$0xff] }
  0xa3   :  { %756 = vmatprep.subr.mxu1 %v294_v13  ;;  %718 = vmatpush2.msra.mxu0 %v229_v14  ;;  %v864_v13 = vld [vmem:[%s2814_s3 + $0x1e8] sm:$0xff]  ;;  %v875_v14 = vld [vmem:[%s2814_s3 + $0x240] sm:$0xff] }
  0xa4   :  { %757 = vmatpush1.msra.mxu1 %v293_v15  ;;  %719 = vmatprep.subr.mxu0 %v226_v16  ;;  %v874_v15 = vld [vmem:[%s2814_s3 + $0x238] sm:$0xff]  ;;  %v863_v16 = vld [vmem:[%s2814_s3 + $0x1e0] sm:$0xff] }
  0xa5   :  { %758 = vmatprep.subr.mxu1 %v290_v17  ;;  %720 = vmatpush2.msra.mxu0 %v225_v18  ;;  %v862_v17 = vld [vmem:[%s2814_s3 + $0x1d8] sm:$0xff]  ;;  %v873_v18 = vld [vmem:[%s2814_s3 + $0x230] sm:$0xff] }
  0xa6   :  { %721 = vmatprep.mubr.f32.mxu0 %v1706_v2  ;;  %759 = vmatpush1.msra.mxu1 %v289_v19  ;;  %v831_v2 = vld [vmem:[%s2814_s3 + $0xe0] sm:$0xff]  ;;  %v872_v19 = vld [vmem:[%s2814_s3 + $0x228] sm:$0xff] }
  0xa7   :  { %792 = vmatprep.mubr.f32.mxu1 %v1268_v11  ;;  %722 = vmatmul.mubr.f32.vlgmr.msra.gmra.mxu0 %v1718_v5  ;;  %v830_v11 = vld [vmem:[%s2814_s3 + $0xd8] sm:$0xff]  ;;  %v829_v5 = vld [vmem:[%s2814_s3 + $0xd0] sm:$0xff] }
  0xa8   :  { %793 = vmatmul.mubr.f32.vlgmr.msra.gmra.mxu1 %v1912_v8  ;;  %943 = vmatprep.subr.mxu0 %v834_v20  ;;  %v828_v8 = vld [vmem:[%s2814_s3 + $0xc8] sm:$0xff]  ;;  %v871_v20 = vld [vmem:[%s2814_s3 + $0x220] sm:$0xff] }
  0xa9   :  { %944 = vmatpush1.msra.mxu0 %v833_v21  ;;  %1014 = vmatprep.subr.mxu1 %v898_v23  ;;  %v861_v21 = vld [vmem:[%s2814_s3 + $0x1d0] sm:$0xff]  ;;  %v867_v23 = vld [vmem:[%s2814_s3 + $0x200] sm:$0xff] }
  0xaa   :  { %945 = vmatprep.subr.mxu0 %v832_v22  ;;  %1015 = vmatpush1.msra.mxu1 %v897_v24  ;;  %v870_v22 = vld [vmem:[%s2814_s3 + $0x218] sm:$0xff]  ;;  %v857_v24 = vld [vmem:[%s2814_s3 + $0x1b0] sm:$0xff] }
  0xab   :  { %946 = vmatpush1.msra.mxu0 %v831_v2  ;;  %1016 = vmatprep.subr.mxu1 %v896_v1  ;;  %v860_v2 = vld [vmem:[%s2814_s3 + $0x1c8] sm:$0xff]  ;;  %v930_v1 = vld [vmem:[%s2814_s3 + $0x3f8] sm:$0xff] }
  0xac   :  { %947 = vmatprep.subr.mxu0 %v830_v11  ;;  %1017 = vmatpush1.msra.mxu1 %v895_v26  ;;  %v869_v11 = vld [vmem:[%s2814_s3 + $0x210] sm:$0xff] }
  0xad   :  { %948 = vmatpush1.msra.mxu0 %v829_v5  ;;  %1018 = vmatprep.subr.mxu1 %v894_v28  ;;  %v859_v5 = vld [vmem:[%s2814_s3 + $0x1c0] sm:$0xff]  ;;  %v929_v26 = vld [vmem:[%s2814_s3 + $0x3f0] sm:$0xff]  ;;  %v928_v28 = vld [vmem:[%s2814_s3 + $0x3e8] sm:$0xff] }
  0xae   :  { %949 = vmatprep.subr.mxu0 %v828_v8  ;;  %1019 = vmatpush1.msra.mxu1 %v893_v30  ;;  %v868_v8 = vld [vmem:[%s2814_s3 + $0x208] sm:$0xff]  ;;  %v927_v30 = vld [vmem:[%s2814_s3 + $0x3e0] sm:$0xff] }
  0xaf   :  { %950 = vmatpush1.msra.mxu0 %v827_v63  ;;  %1020 = vmatprep.subr.mxu1 %v892_v32  ;;  %v858_v63 = vld [vmem:[%s2814_s3 + $0x1b8] sm:$0xff] }
  0xb0   :  { %951 = vmatprep.subr.mxu0 %v826_v25  ;;  %1021 = vmatpush1.msra.mxu1 %v891_v34  ;;  %v856_v25 = vld [vmem:[%s2814_s3 + $0x1a8] sm:$0xff]  ;;  %v926_v32 = vld [vmem:[%s2814_s3 + $0x3d8] sm:$0xff]  ;;  %v925_v34 = vld [vmem:[%s2814_s3 + $0x3d0] sm:$0xff] }
  0xb1   :  { %952 = vmatpush1.msra.mxu0 %v825_v27  ;;  %1022 = vmatprep.subr.mxu1 %v890_v36  ;;  %v855_v27 = vld [vmem:[%s2814_s3 + $0x1a0] sm:$0xff]  ;;  %v924_v36 = vld [vmem:[%s2814_s3 + $0x3c8] sm:$0xff] }
  0xb2   :  { %953 = vmatprep.subr.mxu0 %v824_v29  ;;  %1023 = vmatpush1.msra.mxu1 %v889_v38  ;;  %v854_v29 = vld [vmem:[%s2814_s3 + $0x198] sm:$0xff]  ;;  %v923_v38 = vld [vmem:[%s2814_s3 + $0x3c0] sm:$0xff] }
  0xb3   :  { %954 = vmatpush1.msra.mxu0 %v823_v31  ;;  %1024 = vmatprep.subr.mxu1 %v888_v40  ;;  %v853_v31 = vld [vmem:[%s2814_s3 + $0x190] sm:$0xff]  ;;  %v922_v40 = vld [vmem:[%s2814_s3 + $0x3b8] sm:$0xff] }
  0xb4   :  { %955 = vmatprep.subr.mxu0 %v822_v33  ;;  %1025 = vmatpush1.msra.mxu1 %v887_v42  ;;  %v852_v33 = vld [vmem:[%s2814_s3 + $0x188] sm:$0xff]  ;;  %v921_v42 = vld [vmem:[%s2814_s3 + $0x3b0] sm:$0xff] }
  0xb5   :  { %956 = vmatpush1.msra.mxu0 %v821_v35  ;;  %1026 = vmatprep.subr.mxu1 %v886_v44  ;;  %v851_v35 = vld [vmem:[%s2814_s3 + $0x180] sm:$0xff]  ;;  %v920_v44 = vld [vmem:[%s2814_s3 + $0x3a8] sm:$0xff] }
  0xb6   :  { %957 = vmatprep.subr.mxu0 %v820_v37  ;;  %1027 = vmatpush1.msra.mxu1 %v885_v46  ;;  %v850_v37 = vld [vmem:[%s2814_s3 + $0x178] sm:$0xff]  ;;  %v919_v46 = vld [vmem:[%s2814_s3 + $0x3a0] sm:$0xff] }
  0xb7   :  { %958 = vmatpush1.msra.mxu0 %v819_v39  ;;  %1028 = vmatprep.subr.mxu1 %v884_v48  ;;  %v849_v39 = vld [vmem:[%s2814_s3 + $0x170] sm:$0xff]  ;;  %v918_v48 = vld [vmem:[%s2814_s3 + $0x398] sm:$0xff] }
  0xb8   :  { %959 = vmatprep.subr.mxu0 %v818_v41  ;;  %1029 = vmatpush1.msra.mxu1 %v883_v50  ;;  %v848_v41 = vld [vmem:[%s2814_s3 + $0x168] sm:$0xff]  ;;  %v917_v50 = vld [vmem:[%s2814_s3 + $0x390] sm:$0xff] }
  0xb9   :  { %960 = vmatpush1.msra.mxu0 %v817_v43  ;;  %1030 = vmatprep.subr.mxu1 %v882_v52  ;;  %v847_v43 = vld [vmem:[%s2814_s3 + $0x160] sm:$0xff]  ;;  %v916_v52 = vld [vmem:[%s2814_s3 + $0x388] sm:$0xff] }
  0xba   :  { %961 = vmatprep.subr.mxu0 %v816_v45  ;;  %1031 = vmatpush1.msra.mxu1 %v881_v54  ;;  %v846_v45 = vld [vmem:[%s2814_s3 + $0x158] sm:$0xff]  ;;  %v915_v54 = vld [vmem:[%s2814_s3 + $0x380] sm:$0xff] }
  0xbb   :  { %962 = vmatpush1.msra.mxu0 %v815_v47  ;;  %1032 = vmatprep.subr.mxu1 %v880_v56  ;;  %v845_v47 = vld [vmem:[%s2814_s3 + $0x150] sm:$0xff]  ;;  %v914_v56 = vld [vmem:[%s2814_s3 + $0x378] sm:$0xff] }
  0xbc   :  { %963 = vmatprep.subr.mxu0 %v814_v49  ;;  %1033 = vmatpush1.msra.mxu1 %v879_v58  ;;  %v844_v49 = vld [vmem:[%s2814_s3 + $0x148] sm:$0xff]  ;;  %v913_v58 = vld [vmem:[%s2814_s3 + $0x370] sm:$0xff] }
  0xbd   :  { %964 = vmatpush1.msra.mxu0 %v813_v51  ;;  %1034 = vmatprep.subr.mxu1 %v878_v60  ;;  %v843_v51 = vld [vmem:[%s2814_s3 + $0x140] sm:$0xff]  ;;  %v912_v60 = vld [vmem:[%s2814_s3 + $0x368] sm:$0xff] }
  0xbe   :  { %965 = vmatprep.subr.mxu0 %v812_v53  ;;  %1035 = vmatpush1.msra.mxu1 %v877_v62  ;;  %v842_v53 = vld [vmem:[%s2814_s3 + $0x138] sm:$0xff]  ;;  %v911_v62 = vld [vmem:[%s2814_s3 + $0x360] sm:$0xff] }
  0xbf   :  { %966 = vmatpush1.msra.mxu0 %v811_v55  ;;  %1036 = vmatprep.subr.mxu1 %v876_v3  ;;  %v841_v55 = vld [vmem:[%s2814_s3 + $0x130] sm:$0xff]  ;;  %v910_v3 = vld [vmem:[%s2814_s3 + $0x358] sm:$0xff] }
  0xc0   :  { %967 = vmatprep.subr.mxu0 %v810_v57  ;;  %1037 = vmatpush1.msra.mxu1 %v875_v14  ;;  %v840_v57 = vld [vmem:[%s2814_s3 + $0x128] sm:$0xff] }
  0xc1   :  { %968 = vmatpush1.msra.mxu0 %v809_v59  ;;  %1038 = vmatprep.subr.mxu1 %v874_v15  ;;  %v839_v59 = vld [vmem:[%s2814_s3 + $0x120] sm:$0xff]  ;;  %v904_v14 = vld [vmem:[%s2814_s3 + $0x328] sm:$0xff] }
  0xc2   :  { %969 = vmatprep.subr.mxu0 %v808_v61  ;;  %1039 = vmatpush1.msra.mxu1 %v873_v18  ;;  %v838_v61 = vld [vmem:[%s2814_s3 + $0x118] sm:$0xff]  ;;  %v903_v15 = vld [vmem:[%s2814_s3 + $0x320] sm:$0xff]  ;;  %v900_v18 = vld [vmem:[%s2814_s3 + $0x308] sm:$0xff] }
  0xc3   :  { %970 = vmatpush1.msra.mxu0 %v807_v0  ;;  %1040 = vmatprep.subr.mxu1 %v872_v19  ;;  %v837_v0 = vld [vmem:[%s2814_s3 + $0x110] sm:$0xff]  ;;  %v899_v19 = vld [vmem:[%s2814_s3 + $0x300] sm:$0xff] }
  0xc4   :  { %971 = vmatprep.subr.mxu0 %v806_v4  ;;  %1041 = vmatpush1.msra.mxu1 %v871_v20  ;;  %v836_v4 = vld [vmem:[%s2814_s3 + $0x108] sm:$0xff]  ;;  %v353_v20 = vlaneseq }
  0xc5   :  { %972 = vmatpush1.msra.mxu0 %v805_v6  ;;  %1042 = vmatprep.subr.mxu1 %v870_v22  ;;  %v909_v6 = vld [vmem:[%s2814_s3 + $0x350] sm:$0xff] }
  0xc6   :  { %973 = vmatprep.subr.mxu0 %v804_v7  ;;  %1043 = vmatpush1.msra.mxu1 %v869_v11  ;;  %v835_v7 = vld [vmem:[%s2814_s3 + $0x100] sm:$0xff] }
  0xc7   :  { %974 = vmatpush1.msra.mxu0 %v803_v9  ;;  %1044 = vmatprep.subr.mxu1 %v868_v8  ;;  %v908_v9 = vld [vmem:[%s2814_s3 + $0x348] sm:$0xff] }
  0xc8   :  { %975 = vmatprep.subr.mxu0 %v866_v10  ;;  %1045 = vmatpush1.msra.mxu1 %v867_v23  ;;  %v907_v10 = vld [vmem:[%s2814_s3 + $0x340] sm:$0xff] }
  0xc9   :  { %976 = vmatpush2.msra.mxu0 %v865_v12  ;;  %1046 = vmatprep.subr.mxu1 %v930_v1  ;;  %v906_v12 = vld [vmem:[%s2814_s3 + $0x338] sm:$0xff] }
  0xca   :  { %977 = vmatprep.subr.mxu0 %v864_v13  ;;  %1047 = vmatpush2.msra.mxu1 %v929_v26  ;;  %v905_v13 = vld [vmem:[%s2814_s3 + $0x330] sm:$0xff] }
  0xcb   :  { %978 = vmatpush2.msra.mxu0 %v863_v16  ;;  %1048 = vmatprep.subr.mxu1 %v928_v28  ;;  %v902_v16 = vld [vmem:[%s2814_s3 + $0x318] sm:$0xff] }
  0xcc   :  { %979 = vmatprep.subr.mxu0 %v862_v17  ;;  %1049 = vmatpush2.msra.mxu1 %v927_v30  ;;  %v901_v17 = vld [vmem:[%s2814_s3 + $0x310] sm:$0xff] }
  0xcd   :  { %980 = vmatpush2.msra.mxu0 %v861_v21  ;;  %1050 = vmatprep.subr.mxu1 %v926_v32  ;;  %v2690_v21 = vshrl.u32 %v353_v20, 7  ;;  %v1098_v20 = vld [vmem:[%s2816_s5 + $0x18] sm:$0xff] }
  0xce   :  { %981 = vmatprep.subr.mxu0 %v860_v2  ;;  %1051 = vmatpush2.msra.mxu1 %v925_v34  ;;  %v351_v2 = vld [vmem:[%s2815_s2] sm:$0xf] }
  0xcf   :  { %982 = vmatpush2.msra.mxu0 %v859_v5  ;;  %1052 = vmatprep.subr.mxu1 %v924_v36  ;;  %v355_v22 = vsub.s32 0, %v2690_v21  ;;  %v359_v11 = vsub.s32 1, %v2690_v21  ;;  %v367_v36 = vsub.s32 3, %v2690_v21 }
  0xd0   :  { %983 = vmatprep.subr.mxu0 %v858_v63  ;;  %1053 = vmatpush2.msra.mxu1 %v923_v38 }
  0xd1   :  { %984 = vmatpush2.msra.mxu0 %v857_v24  ;;  %1054 = vmatprep.subr.mxu1 %v922_v40  ;;  %v356_v8 = vrot.slane %v351_v2, %v355_v22  ;;  %v360_v63 = vrot.slane %v351_v2, %v359_v11 }
  0xd2   :  { %985 = vmatprep.subr.mxu0 %v856_v25  ;;  %1055 = vmatpush2.msra.mxu1 %v921_v42 }
  0xd3   :  { %986 = vmatpush2.msra.mxu0 %v855_v27  ;;  %1056 = vmatprep.subr.mxu1 %v920_v44 }
  0xd4   :  { %987 = vmatprep.subr.mxu0 %v854_v29  ;;  %1057 = vmatpush2.msra.mxu1 %v919_v46 }
  0xd5   :  { %988 = vmatpush2.msra.mxu0 %v853_v31  ;;  %1058 = vmatprep.subr.mxu1 %v918_v48 }
  0xd6   :  { %989 = vmatprep.subr.mxu0 %v852_v33  ;;  %1059 = vmatpush2.msra.mxu1 %v917_v50 }
  0xd7   :  { %990 = vmatpush2.msra.mxu0 %v851_v35  ;;  %1060 = vmatprep.subr.mxu1 %v916_v52  ;;  %v363_v35 = vsub.s32 2, %v2690_v21 }
  0xd8   :  { %991 = vmatprep.subr.mxu0 %v850_v37  ;;  %1061 = vmatpush2.msra.mxu1 %v915_v54  ;;  %v1110_v54 = vld [vmem:[%s2816_s5 + $0x78] sm:$0xff] }
  0xd9   :  { %992 = vmatpush2.msra.mxu0 %v849_v39  ;;  %1062 = vmatprep.subr.mxu1 %v914_v56  ;;  %v364_v38 = vrot.slane %v351_v2, %v363_v35  ;;  %v368_v39 = vrot.slane %v351_v2, %v367_v36  ;;  %v1109_v56 = vld [vmem:[%s2816_s5 + $0x70] sm:$0xff] }
  0xda   :  { %993 = vmatprep.subr.mxu0 %v848_v41  ;;  %1063 = vmatpush2.msra.mxu1 %v913_v58  ;;  %v1108_v58 = vld [vmem:[%s2816_s5 + $0x68] sm:$0xff]  ;;  %v1113_v2 = vld [vmem:[%s2816_s5 + $0x90] sm:$0xff] }
  0xdb   :  { %994 = vmatpush2.msra.mxu0 %v847_v43  ;;  %1064 = vmatprep.subr.mxu1 %v912_v60  ;;  %v1107_v60 = vld [vmem:[%s2816_s5 + $0x60] sm:$0xff] }
  0xdc   :  { %995 = vmatprep.subr.mxu0 %v846_v45  ;;  %1065 = vmatpush2.msra.mxu1 %v911_v62  ;;  %v1106_v62 = vld [vmem:[%s2816_s5 + $0x58] sm:$0xff] }
  0xdd   :  { %996 = vmatpush2.msra.mxu0 %v845_v47  ;;  %1066 = vmatprep.subr.mxu1 %v910_v3  ;;  %v1105_v3 = vld [vmem:[%s2816_s5 + $0x50] sm:$0xff] }
  0xde   :  { %997 = vmatprep.subr.mxu0 %v844_v49  ;;  %1067 = vmatpush2.msra.mxu1 %v909_v6  ;;  %v1104_v6 = vld [vmem:[%s2816_s5 + $0x48] sm:$0xff] }
  0xdf   :  { %998 = vmatpush2.msra.mxu0 %v843_v51  ;;  %1068 = vmatprep.subr.mxu1 %v908_v9  ;;  %v1103_v9 = vld [vmem:[%s2816_s5 + $0x40] sm:$0xff] }
  0xe0   :  { %999 = vmatprep.subr.mxu0 %v842_v53  ;;  %1069 = vmatpush2.msra.mxu1 %v907_v10  ;;  %v1126_v53 = vld [vmem:[%s2816_s5 + $0xf8] sm:$0xff] }
  0xe1   :  { %1000 = vmatpush2.msra.mxu0 %v841_v55  ;;  %1070 = vmatprep.subr.mxu1 %v906_v12  ;;  %v1125_v55 = vld [vmem:[%s2816_s5 + $0xf0] sm:$0xff]  ;;  %v1118_v10 = vld [vmem:[%s2816_s5 + $0xb8] sm:$0xff] }
  0xe2   :  { %1001 = vmatprep.subr.mxu0 %v840_v57  ;;  %1071 = vmatpush2.msra.mxu1 %v905_v13  ;;  %v1124_v57 = vld [vmem:[%s2816_s5 + $0xe8] sm:$0xff]  ;;  %v1102_v12 = vld [vmem:[%s2816_s5 + $0x38] sm:$0xff]  ;;  %v1117_v13 = vld [vmem:[%s2816_s5 + $0xb0] sm:$0xff] }
  0xe3   :  { %1002 = vmatpush2.msra.mxu0 %v839_v59  ;;  %1072 = vmatprep.subr.mxu1 %v904_v14  ;;  %v1123_v59 = vld [vmem:[%s2816_s5 + $0xe0] sm:$0xff]  ;;  %v1101_v14 = vld [vmem:[%s2816_s5 + $0x30] sm:$0xff] }
  0xe4   :  { %1003 = vmatprep.subr.mxu0 %v838_v61  ;;  %1073 = vmatpush2.msra.mxu1 %v903_v15  ;;  %v1122_v61 = vld [vmem:[%s2816_s5 + $0xd8] sm:$0xff]  ;;  %v1116_v15 = vld [vmem:[%s2816_s5 + $0xa8] sm:$0xff] }
  0xe5   :  { %1004 = vmatpush2.msra.mxu0 %v837_v0  ;;  %1074 = vmatprep.subr.mxu1 %v902_v16  ;;  %v1121_v0 = vld [vmem:[%s2816_s5 + $0xd0] sm:$0xff]  ;;  %v1100_v16 = vld [vmem:[%s2816_s5 + $0x28] sm:$0xff] }
  0xe6   :  { %1005 = vmatprep.subr.mxu0 %v836_v4  ;;  %1075 = vmatpush2.msra.mxu1 %v901_v17  ;;  %v1120_v4 = vld [vmem:[%s2816_s5 + $0xc8] sm:$0xff]  ;;  %v1115_v17 = vld [vmem:[%s2816_s5 + $0xa0] sm:$0xff] }
  0xe7   :  { %1006 = vmatpush2.msra.mxu0 %v835_v7  ;;  %1076 = vmatprep.subr.mxu1 %v900_v18  ;;  %v1119_v7 = vld [vmem:[%s2816_s5 + $0xc0] sm:$0xff] }
  0xe8   :  { %1077 = vmatpush2.msra.mxu1 %v899_v19  ;;  %1220 = vmatprep.subr.mxu0 %v1126_v53  ;;  %v1099_v18 = vld [vmem:[%s2816_s5 + $0x20] sm:$0xff]  ;;  %v1114_v19 = vld [vmem:[%s2816_s5 + $0x98] sm:$0xff] }
 0x103   :  { %v439_v5 = vpop.f32.mrf.mxu0 }
 0x104   :  { %v440_v1 = vadd.f32 %v439_v5, %v356_v8  ;;  %v1097_v5 = vld [vmem:[%s2816_s5 + $0x10] sm:$0xff]  ;;  %v1112_v8 = vld [vmem:[%s2816_s5 + $0x88] sm:$0xff] }
 0x105   :  { %v510_v23 = vpop.f32.mrf.mxu1  ;;  %v441_v24 = vpop.f32.mrf.mxu0 }
 0x106   :  { %v442_v25 = vadd.f32 %v441_v24, %v360_v63  ;;  %v511_v27 = vadd.f32 %v510_v23, %v440_v1  ;;  %v1096_v63 = vld [vmem:[%s2816_s5 + $0x8] sm:$0xff]  ;;  %v1111_v23 = vld [vmem:[%s2816_s5 + $0x80] sm:$0xff] }
 0x107   :  { %v512_v26 = vpop.f32.mrf.mxu1  ;;  %v1095_v24 = vld [vmem:[%s2816_s5] sm:$0xff] }
 0x108   :  { %v513_v29 = vadd.f32 %v512_v26, %v442_v25  ;;  %v931_v1 = vld [vmem:[%s2817_s4] sm:$0x3] }
 0x109   :  { %v936_v26 = vrot.slane %v931_v1, %v355_v22 }
 0x125   :  { %v581_v28 = vpop.f32.mrf.mxu0 }
 0x126   :  { %v582_v30 = vadd.f32 %v581_v28, %v511_v27  ;;  %v940_v27 = vrot.slane %v931_v1, %v359_v11 }
 0x127   :  { %v583_v31 = vpop.f32.mrf.mxu0 }
 0x128   :  { %v584_v32 = vadd.f32 %v583_v31, %v513_v29  ;;  %v799_v34 = vmax.f32 %v582_v30, 0.0 }
 0x12a   :  { %v800_v33 = vmax.f32 %v584_v32, 0.0 }
 0x12c   :  { %1007 = vmatprep.mubr.f32.mxu0 %v800_v33 }
 0x12d   :  { %1008 = vmatmul.mubr.f32.vlgmr.msra.gmra.mxu0 %v799_v34 }
 0x12e   :  { %1221 = vmatpush3.msra.mxu0 %v1110_v54 }
 0x12f   :  { %1222 = vmatprep.subr.mxu0 %v1125_v55 }
 0x130   :  { %1223 = vmatpush3.msra.mxu0 %v1109_v56 }
 0x131   :  { %1224 = vmatprep.subr.mxu0 %v1124_v57 }
 0x132   :  { %1225 = vmatpush3.msra.mxu0 %v1108_v58 }
 0x133   :  { %1226 = vmatprep.subr.mxu0 %v1123_v59 }
 0x134   :  { %1227 = vmatpush3.msra.mxu0 %v1107_v60 }
 0x135   :  { %1228 = vmatprep.subr.mxu0 %v1122_v61 }
 0x136   :  { %1229 = vmatpush3.msra.mxu0 %v1106_v62 }
 0x137   :  { %1230 = vmatprep.subr.mxu0 %v1121_v0 }
 0x138   :  { %1231 = vmatpush3.msra.mxu0 %v1105_v3 }
 0x139   :  { %1232 = vmatprep.subr.mxu0 %v1120_v4 }
 0x13a   :  { %1233 = vmatpush3.msra.mxu0 %v1104_v6 }
 0x13b   :  { %1234 = vmatprep.subr.mxu0 %v1119_v7 }
 0x13c   :  { %1235 = vmatpush3.msra.mxu0 %v1103_v9 }
 0x13d   :  { %1236 = vmatprep.subr.mxu0 %v1118_v10 }
 0x13e   :  { %1237 = vmatpush3.msra.mxu0 %v1102_v12 }
 0x13f   :  { %1238 = vmatprep.subr.mxu0 %v1117_v13 }
 0x140   :  { %1239 = vmatpush3.msra.mxu0 %v1101_v14 }
 0x141   :  { %1240 = vmatprep.subr.mxu0 %v1116_v15 }
 0x142   :  { %1241 = vmatpush3.msra.mxu0 %v1100_v16 }
 0x143   :  { %1242 = vmatprep.subr.mxu0 %v1115_v17 }
 0x144   :  { %1243 = vmatpush3.msra.mxu0 %v1099_v18 }
 0x145   :  { %1244 = vmatprep.subr.mxu0 %v1114_v19 }
 0x146   :  { %1245 = vmatpush3.msra.mxu0 %v1098_v20 }
 0x147   :  { %v652_v37 = vpop.f32.mrf.mxu1  ;;  %1246 = vmatprep.subr.mxu0 %v1113_v2 }
 0x148   :  { %v653_v41 = vadd.f32 %v652_v37, %v364_v38  ;;  %1247 = vmatpush3.msra.mxu0 %v1097_v5 }
 0x149   :  { %v654_v40 = vpop.f32.mrf.mxu1  ;;  %1248 = vmatprep.subr.mxu0 %v1112_v8 }
 0x14a   :  { %v655_v44 = vadd.f32 %v654_v40, %v368_v39  ;;  %1249 = vmatpush3.msra.mxu0 %v1096_v63 }
 0x14b   :  { %1250 = vmatprep.subr.mxu0 %v1111_v23 }
 0x14c   :  { %1251 = vmatpush3.msra.mxu0 %v1095_v24 }
 0x167   :  { %v723_v42 = vpop.f32.mrf.mxu0 }
 0x168   :  { %v794_v43 = vpop.f32.mrf.mxu1  ;;  %v724_v45 = vadd.f32 %v723_v42, %v653_v41 }
 0x169   :  { %v725_v46 = vpop.f32.mrf.mxu0 }
 0x16a   :  { %v726_v47 = vadd.f32 %v725_v46, %v655_v44  ;;  %v795_v48 = vadd.f32 %v794_v43, %v724_v45  ;;  %v796_v49 = vpop.f32.mrf.mxu1  ;;  %v1219_v44 = vld [vmem:[%s2818_s6] ss:$0 sm:$0xff] }
 0x16c   :  { %v797_v50 = vadd.f32 %v796_v49, %v726_v47  ;;  %v801_v52 = vmax.f32 %v795_v48, 0.0 }
 0x16e   :  { %v802_v51 = vmax.f32 %v797_v50, 0.0 }
 0x170   :  { %1078 = vmatprep.mubr.f32.mxu1 %v802_v51 }
 0x171   :  { %1079 = vmatmul.mubr.f32.vlgmr.msra.gmra.mxu1 %v801_v52 }
 0x1ed   :  { %v1009_v25 = vpop.f32.mrf.mxu0 }
 0x1ee   :  { %v1010_v29 = vadd.f32 %v1009_v25, %v936_v26 }
 0x1ef   :  { %v1011_v28 = vpop.f32.mrf.mxu0 }
 0x1f0   :  { %v1012_v31 = vadd.f32 %v1011_v28, %v940_v27 }
 0x231   :  { %v1080_v30 = vpop.f32.mrf.mxu1 }
 0x232   :  { %v1081_v32 = vadd.f32 %v1080_v30, %v1010_v29 }
 0x233   :  { %v1082_v33 = vpop.f32.mrf.mxu1 }
 0x234   :  { %v1085_v34 = vsub.f32 0.0, %v1081_v32  ;;  %v1083_v35 = vadd.f32 %v1082_v33, %v1012_v31 }
 0x236   :  { %v1087_v36 = vmul.f32 1.442695, %v1085_v34  ;;  %v1086_v37 = vsub.f32 0.0, %v1083_v35 }
 0x238   :  { %1256 = vpow2.f32 %v1087_v36  ;;  %v1089_v38 = vmul.f32 1.442695, %v1086_v37 }
 0x23a   :  { %1258 = vpow2.f32 %v1089_v38 }
 0x245   :  { %v1257_v39 = vpop.eup %1256 }
 0x246   :  { %v1091_v41 = vadd.f32 1.0, %v1257_v39 }
 0x247   :  { %v1259_v40 = vpop.eup %1258 }
 0x248   :  { %v1092_v22 = vadd.f32 1.0, %v1259_v40 }
 0x24a   :  { %1260 = vrcp.f32 %v1092_v22 }
 0x24b   :  { %1262 = vrcp.f32 %v1091_v41 }
 0x257   :  { %v1261_v21 = vpop.eup %1260 }
 0x258   :  { %v1263_v11 = vpop.eup %1262  ;;  %1198 = vmatprep.mubr.f32.mxu0 %v1261_v21 }
 0x259   :  { %1199 = vmatmul.mubr.f32.vlgmr.msra.gmra.mxu0 %v1263_v11 }
 0x319   :  { %v1252_v42 = vpop.f32.mrf.mxu0 }
 0x31b   :  { %v1253_v43 = vpop.f32.mrf.mxu0 }
 0x31c   :  { %v1254_v45 = vadd.f32 %v1253_v43, %v1252_v42 }
 0x31e   :  { %v1201_v46 = vadd.f32 %v1254_v45, %v1219_v44 }
 0x320   :  { %1204 = vmax.xlane.f32.xlu0 %v1201_v46 }
 0x3a9   :  { %v1205_v47 = vpop.xlane.xlu0 %1204 }
 0x3aa   :  { %v1206_v48 = vsub.f32 %v1201_v46, %v1205_v47 }
 0x3ac   :  { %v1207_v49 = vmul.f32 1.442695, %v1206_v48 }
 0x3ae   :  { %1264 = vpow2.f32 %v1207_v49 }
 0x3bb   :  { %v1265_v50 = vpop.eup %1264 }
 0x3bc   :  { %1209 = vadd.xlane.f32.xlu0 %v1265_v50 }
 0x445   :  { %v1210_v51 = vpop.xlane.xlu0 %1209 }
 0x446   :  { %1266 = vlog2.f32 %v1210_v51 }
 0x453   :  { %v1267_v52 = vpop.eup %1266 }
 0x454   :  { %v1212_v53 = vmul.f32 0.6931472, %v1267_v52 }
 0x456   :  { %v1213_v54 = vsub.f32 %v1206_v48, %v1212_v53 }
 0x458   :  { %1214 = vst [vmem:[%s2819_s7] sm:$0xff] %v1213_v54 }

</bundles_post_ra>
